<compile_context>
chip_gen: v7x
topology: tpu7x:2x2x1
jax: 0.10.0
libtpu: 0.0.40
codegen_flags: <defaults>
</compile_context>

<pallas_src>
import functools

import jax
import jax.numpy as jnp
from jax.experimental import pallas as pl
from jax.experimental.pallas import tpu as pltpu

_LANE = 128  # TPU lane width


def _round_up(n, m):
    return ((n + m - 1) // m) * m


def _encoder_kernel(x_ref, w1_ref, b1_ref, wh_ref, bh_ref, eps_ref,
                    z_ref, lv_ref, mu_ref, *, zd, zp):
    """One batch tile: fused encoder + both heads, three narrow full-block outputs."""
    cd = w1_ref.dtype
    # In-kernel cast (free on VPU) instead of an extra wrapper cast pass over HBM.
    x = x_ref[...].astype(cd)

    # hidden = x @ W_enc + b_enc  (no activation, matching the module's forward()).
    h = jnp.dot(x, w1_ref[...], preferred_element_type=jnp.float32) + b1_ref[...]

    # Fused heads: one MXU pass producing [logvar_raw | mu_raw] at 128-aligned offsets.
    heads = jnp.dot(h.astype(cd), wh_ref[...],
                    preferred_element_type=jnp.float32) + bh_ref[...]

    # Post-matmul elementwise math stays f32 (EUP exp; safe on v5e too).
    logvar = jnp.exp(0.5 * heads[:, 0:zd])          # lane-aligned start
    mu = heads[:, zp:zp + zd]                       # lane-aligned start (zp % 128 == 0)
    z = eps_ref[...].astype(jnp.float32) * mu + logvar

    # Narrow outputs: full-block stores; a few masked vst beat 3-8x extra HBM bytes.
    z_ref[...] = z.astype(z_ref.dtype)
    lv_ref[...] = logvar.astype(lv_ref.dtype)
    mu_ref[...] = mu.astype(mu_ref.dtype)


def prepare_params(params, compute_dtype=jnp.float32):
    """Pads / fuses / casts the weights ONCE.  Cache the result across forward calls.

    Layout:
      w1 : [in_features, Hp]        (compute_dtype; extra columns zero)
      b1 : [1, Hp]                  (f32; extra columns zero)
      wh : [Hp, 2*Zp] = [W_logvar | W_mu] at 128-aligned column offsets (compute_dtype)
      bh : [1, 2*Zp]  = [b_logvar | b_mu]                                (f32)
    bf16 (or fp8 on v7x) weights halve/quarter weight DMA bytes; MXU accumulation
    stays f32 so only input rounding differs.
    """
    in_features, hidden_dim = params["w1"].shape
    z_dim = params["wm"].shape[1]
    Hp = _round_up(hidden_dim, _LANE)
    Zp = _round_up(z_dim, _LANE)
    cd = compute_dtype

    w1_p = jnp.zeros((in_features, Hp), cd).at[:, :hidden_dim].set(
        params["w1"].astype(cd))
    b1_p = jnp.zeros((1, Hp), jnp.float32).at[:, :hidden_dim].set(
        params["b1"].astype(jnp.float32))

    wh_p = jnp.zeros((Hp, 2 * Zp), cd)
    wh_p = wh_p.at[:hidden_dim, 0:z_dim].set(params["wl"].astype(cd))
    wh_p = wh_p.at[:hidden_dim, Zp:Zp + z_dim].set(params["wm"].astype(cd))
    bh_p = jnp.zeros((1, 2 * Zp), jnp.float32)
    bh_p = bh_p.at[:, 0:z_dim].set(params["bl"].astype(jnp.float32))
    bh_p = bh_p.at[:, Zp:Zp + z_dim].set(params["bm"].astype(jnp.float32))

    return {"w1": w1_p, "b1": b1_p, "wh": wh_p, "bh": bh_p, "z_dim": z_dim}


def encoder_net_forward(x, prep, epsilon, *, tm=512):
    """Runs the EncoderNet forward pass in one batch-tiled Pallas kernel.

    Args:
      x:       [B, in_features] float32 inputs.
      prep:    output of prepare_params() (prepare once per model, reuse every call).
      epsilon: [B, z_dim] float32 standard-normal noise (torch.randn_like equivalent).
      tm:      max batch-tile rows per grid step (512 works well on v6e/v5e; the VMEM
               estimate below bumps vmem_limit_bytes when needed, e.g. on v7x).
    Returns:
      (z, logvar, mu), each [B, z_dim] float32.
    """
    w1_p, b1_p, wh_p, bh_p = prep["w1"], prep["b1"], prep["wh"], prep["bh"]
    zd = prep["z_dim"]
    B, F = x.shape
    Hp = w1_p.shape[1]
    Zp = wh_p.shape[1] // 2
    assert w1_p.shape[0] == F and epsilon.shape == (B, zd)

    # --- batch tile: >= 2 grid steps when possible so v7x can use both TCs ----------
    if B <= 8:
        tm = B                                        # single tile == full batch dim
    elif B <= tm:
        tm = max(8, _round_up(pl.cdiv(B, 2), 8))      # split small batches in two
    grid = (pl.cdiv(B, tm),)                          # ragged last step is clipped

    # --- VMEM budget / compiler params -----------------------------------------------
    cdb = jnp.dtype(w1_p.dtype).itemsize
    w_bytes = F * Hp * cdb + Hp * 2 * Zp * cdb + (Hp + 2 * Zp) * 4
    act_bytes = 2 * tm * (F + zd + 3 * zd) * 4        # double-buffered activations/outs
    inter_bytes = tm * (Hp + 2 * Zp) * 4              # h / heads f32 temporaries
    vmem_est = 2 * w_bytes + act_bytes + inter_bytes  # conservative (2x weights)
    vmem_limit = None
    if vmem_est > (30 << 20):                         # above default scoped limit
        vmem_limit = int(min(vmem_est + (16 << 20), 100 << 20))
    compiler_params = pltpu.CompilerParams(
        dimension_semantics=("parallel",),            # shard rows over v7x's 2 TCs
        vmem_limit_bytes=vmem_limit,
    )

    cost = pl.CostEstimate(
        flops=2 * B * (F * Hp + Hp * 2 * Zp),
        transcendentals=B * zd,
        bytes_accessed=B * (F + zd + 3 * zd) * 4 + w_bytes,
    )

    kernel = functools.partial(_encoder_kernel, zd=zd, zp=Zp)
    out_shape = (
        jax.ShapeDtypeStruct((B, zd), jnp.float32),   # z
        jax.ShapeDtypeStruct((B, zd), jnp.float32),   # logvar (actually std-dev)
        jax.ShapeDtypeStruct((B, zd), jnp.float32),   # mu
    )

    def run(single_buffer_weights):
        wkw = dict(pipeline_mode=pl.Buffered(1)) if single_buffer_weights else {}
        row = lambda i: (i, 0)
        const = lambda i: (0, 0)
        in_specs = [
            pl.BlockSpec((tm, F), row),                 # x (unpadded, streamed)
            pl.BlockSpec((F, Hp), const, **wkw),        # w1 (VMEM-resident)
            pl.BlockSpec((1, Hp), const, **wkw),        # b1
            pl.BlockSpec((Hp, 2 * Zp), const, **wkw),   # fused head W [logvar | mu]
            pl.BlockSpec((1, 2 * Zp), const, **wkw),    # fused head b
            pl.BlockSpec((tm, zd), row),                # epsilon (unpadded)
        ]
        out_specs = [
            pl.BlockSpec((tm, zd), row),
            pl.BlockSpec((tm, zd), row),
            pl.BlockSpec((tm, zd), row),
        ]
        return pl.pallas_call(
            kernel,
            out_shape=out_shape,
            grid_spec=pltpu.PrefetchScalarGridSpec(
                num_scalar_prefetch=0,
                grid=grid,
                in_specs=in_specs,
                out_specs=out_specs,
            ),
            compiler_params=compiler_params,
            cost_estimate=cost,
        )(x, w1_p, b1_p, wh_p, bh_p, epsilon)

    try:
        z, logvar, mu = run(single_buffer_weights=True)
    except Exception:
        # pipeline_mode=Buffered(1) not supported by this Pallas build: fall back to
        # the default double-buffered weight blocks (correctness is identical).
        z, logvar, mu = run(single_buffer_weights=False)

    return z, logvar, mu


def init_params(key, in_features, hidden_dim, z_dim):
    """Deterministic synthetic parameters (PyTorch Linear shapes, pre-transposed)."""
    k1, k2, k3, k4, k5, k6 = jax.random.split(key, 6)
    s1 = 1.0 / jnp.sqrt(in_features)
    s2 = 1.0 / jnp.sqrt(hidden_dim)
    return {
        "w1": jax.random.uniform(k1, (in_features, hidden_dim), jnp.float32, -s1, s1),
        "b1": jax.random.uniform(k2, (1, hidden_dim), jnp.float32, -s1, s1),
        "wl": jax.random.uniform(k3, (hidden_dim, z_dim), jnp.float32, -s2, s2),
        "bl": jax.random.uniform(k4, (1, z_dim), jnp.float32, -s2, s2),
        "wm": jax.random.uniform(k5, (hidden_dim, z_dim), jnp.float32, -s2, s2),
        "bm": jax.random.uniform(k6, (1, z_dim), jnp.float32, -s2, s2),
    }


if __name__ == "__main__":
    # Small shapes consistent with the module; batch=20 exercises a 2-step grid with a
    # ragged last tile (tm=16, steps of 16 + 4 rows).
    batch, in_features, hidden_dim, z_dim = 20, 32, 32, 16

    key = jax.random.PRNGKey(0)
    k_x, k_p, k_eps = jax.random.split(key, 3)

    x = jax.random.normal(k_x, (batch, in_features), jnp.float32)
    params = init_params(k_p, in_features, hidden_dim, z_dim)
    # TODO(synk): torch.randn_like(mu) has no in-kernel equivalent here; the N(0,1)
    # noise is generated deterministically in the wrapper and passed in.
    epsilon = jax.random.normal(k_eps, (batch, z_dim), jnp.float32)

    # Pure-JAX reference of the same (unpadded) math.
    h_ref = x @ params["w1"] + params["b1"]
    lv_ref = jnp.exp(0.5 * (h_ref @ params["wl"] + params["bl"]))
    mu_ref = h_ref @ params["wm"] + params["bm"]
    z_ref = epsilon * mu_ref + lv_ref

    # f32 path: exact check. Weights are prepared once and reused across calls.
    prep_f32 = prepare_params(params, compute_dtype=jnp.float32)
    z, logvar, mu = encoder_net_forward(x, prep_f32, epsilon)
    jax.block_until_ready((z, logvar, mu))
    assert jnp.allclose(z, z_ref, atol=1e-5, rtol=1e-5)
    assert jnp.allclose(logvar, lv_ref, atol=1e-5, rtol=1e-5)
    assert jnp.allclose(mu, mu_ref, atol=1e-5, rtol=1e-5)

    # bf16 weight/matmul path (valid on v5e/v6e/v7x; f32 accumulation + f32 epilogue),
    # validated with a looser tolerance.
    prep_bf16 = prepare_params(params, compute_dtype=jnp.bfloat16)
    z16, lv16, mu16 = encoder_net_forward(x, prep_bf16, epsilon)
    jax.block_until_ready((z16, lv16, mu16))
    assert jnp.allclose(z16, z_ref, atol=5e-2, rtol=5e-2)
    assert jnp.allclose(lv16, lv_ref, atol=5e-2, rtol=5e-2)
    assert jnp.allclose(mu16, mu_ref, atol=5e-2, rtol=5e-2)

    print("KERNEL_OK")
</pallas_src>

<mosaic_0001>
module attributes {stable_mosaic.version = 11 : i64} {
  func.func @_encoder_kernel(%arg0: i32, %arg1: memref<16x32xf32, #tpu.memory_space<vmem>>, %arg2: memref<32x128xf32, #tpu.memory_space<vmem>>, %arg3: memref<1x128xf32, #tpu.memory_space<vmem>>, %arg4: memref<128x256xf32, #tpu.memory_space<vmem>>, %arg5: memref<1x256xf32, #tpu.memory_space<vmem>>, %arg6: memref<16x16xf32, #tpu.memory_space<vmem>>, %arg7: memref<16x16xf32, #tpu.memory_space<vmem>>, %arg8: memref<16x16xf32, #tpu.memory_space<vmem>>, %arg9: memref<16x16xf32, #tpu.memory_space<vmem>>) attributes {dimension_semantics = [#tpu.dimension_semantics<parallel>], iteration_bounds = array<i64: 2>, scalar_prefetch = 0 : i64, scratch_operands = 0 : i64, tpu.core_type = #tpu.core_type<tc>, window_params = [{transform_indices = @transform_0, window_bounds = array<i64: 16, 32>}, {pipeline_mode = #tpu.pipeline_mode<synchronous>, transform_indices = @transform_1, window_bounds = array<i64: 32, 128>}, {pipeline_mode = #tpu.pipeline_mode<synchronous>, transform_indices = @transform_2, window_bounds = array<i64: 1, 128>}, {pipeline_mode = #tpu.pipeline_mode<synchronous>, transform_indices = @transform_3, window_bounds = array<i64: 128, 256>}, {pipeline_mode = #tpu.pipeline_mode<synchronous>, transform_indices = @transform_4, window_bounds = array<i64: 1, 256>}, {transform_indices = @transform_5, window_bounds = array<i64: 16, 16>}, {transform_indices = @transform_6, window_bounds = array<i64: 16, 16>}, {transform_indices = @transform_7, window_bounds = array<i64: 16, 16>}, {transform_indices = @transform_8, window_bounds = array<i64: 16, 16>}]} {
    %c0 = arith.constant 0 : index
    %c0_0 = arith.constant 0 : index
    %0 = vector.load %arg1[%c0, %c0_0] : memref<16x32xf32, #tpu.memory_space<vmem>>, vector<16x32xf32>
    %c0_1 = arith.constant 0 : index
    %c0_2 = arith.constant 0 : index
    %1 = vector.load %arg2[%c0_1, %c0_2] : memref<32x128xf32, #tpu.memory_space<vmem>>, vector<32x128xf32>
    %cst = arith.constant dense<0.000000e+00> : vector<16x128xf32>
    %2 = tpu.matmul %0, %1, %cst {dimension_numbers = #tpu.dot_dimension_numbers<[1], [0], [0], [1], [0, 0, 1, 1], [], []>} : vector<16x32xf32>, vector<32x128xf32>, vector<16x128xf32> -> vector<16x128xf32>
    %c0_3 = arith.constant 0 : index
    %c0_4 = arith.constant 0 : index
    %3 = vector.load %arg3[%c0_3, %c0_4] : memref<1x128xf32, #tpu.memory_space<vmem>>, vector<1x128xf32>
    %4 = vector.broadcast %3 : vector<1x128xf32> to vector<16x128xf32>
    %5 = arith.addf %2, %4 : vector<16x128xf32>
    %c0_5 = arith.constant 0 : index
    %c0_6 = arith.constant 0 : index
    %6 = vector.load %arg4[%c0_5, %c0_6] : memref<128x256xf32, #tpu.memory_space<vmem>>, vector<128x256xf32>
    %cst_7 = arith.constant dense<0.000000e+00> : vector<16x256xf32>
    %7 = tpu.matmul %5, %6, %cst_7 {dimension_numbers = #tpu.dot_dimension_numbers<[1], [0], [0], [1], [0, 0, 1, 1], [], []>} : vector<16x128xf32>, vector<128x256xf32>, vector<16x256xf32> -> vector<16x256xf32>
    %c0_8 = arith.constant 0 : index
    %c0_9 = arith.constant 0 : index
    %8 = vector.load %arg5[%c0_8, %c0_9] : memref<1x256xf32, #tpu.memory_space<vmem>>, vector<1x256xf32>
    %9 = vector.broadcast %8 : vector<1x256xf32> to vector<16x256xf32>
    %10 = arith.addf %7, %9 : vector<16x256xf32>
    %11 = vector.extract_strided_slice %10 {offsets = [0, 0], sizes = [16, 16], strides = [1, 1]} : vector<16x256xf32> to vector<16x16xf32>
    %cst_10 = arith.constant 5.000000e-01 : f32
    %12 = vector.broadcast %cst_10 : f32 to vector<16x16xf32>
    %13 = arith.mulf %12, %11 : vector<16x16xf32>
    %14 = math.exp %13 : vector<16x16xf32>
    %15 = vector.extract_strided_slice %10 {offsets = [0, 128], sizes = [16, 16], strides = [1, 1]} : vector<16x256xf32> to vector<16x16xf32>
    %c0_11 = arith.constant 0 : index
    %c0_12 = arith.constant 0 : index
    %16 = vector.load %arg6[%c0_11, %c0_12] : memref<16x16xf32, #tpu.memory_space<vmem>>, vector<16x16xf32>
    %17 = arith.mulf %16, %15 : vector<16x16xf32>
    %18 = arith.addf %17, %14 : vector<16x16xf32>
    %c0_13 = arith.constant 0 : index
    %c0_14 = arith.constant 0 : index
    %19 = vector.load %arg7[%c0_13, %c0_14] : memref<16x16xf32, #tpu.memory_space<vmem>>, vector<16x16xf32>
    tpu.vector_store %arg7[%c0_13, %c0_14], %18 {strides = array<i32>} : memref<16x16xf32, #tpu.memory_space<vmem>>, vector<16x16xf32>,
    %c0_15 = arith.constant 0 : index
    %c0_16 = arith.constant 0 : index
    %20 = vector.load %arg8[%c0_15, %c0_16] : memref<16x16xf32, #tpu.memory_space<vmem>>, vector<16x16xf32>
    tpu.vector_store %arg8[%c0_15, %c0_16], %14 {strides = array<i32>} : memref<16x16xf32, #tpu.memory_space<vmem>>, vector<16x16xf32>,
    %c0_17 = arith.constant 0 : index
    %c0_18 = arith.constant 0 : index
    %21 = vector.load %arg9[%c0_17, %c0_18] : memref<16x16xf32, #tpu.memory_space<vmem>>, vector<16x16xf32>
    tpu.vector_store %arg9[%c0_17, %c0_18], %15 {strides = array<i32>} : memref<16x16xf32, #tpu.memory_space<vmem>>, vector<16x16xf32>,
    return
  }
  func.func @transform_0(%arg0: i32) -> (i32, i32) {
    %c0_i32 = arith.constant 0 : i32
    %c0_i32_0 = arith.constant 0 : i32
    return %arg0, %c0_i32 : i32, i32
  }
  func.func @transform_1(%arg0: i32) -> (i32, i32) {
    %c0_i32 = arith.constant 0 : i32
    %c0_i32_0 = arith.constant 0 : i32
    %c0_i32_1 = arith.constant 0 : i32
    return %c0_i32, %c0_i32_0 : i32, i32
  }
  func.func @transform_2(%arg0: i32) -> (i32, i32) {
    %c0_i32 = arith.constant 0 : i32
    %c0_i32_0 = arith.constant 0 : i32
    %c0_i32_1 = arith.constant 0 : i32
    return %c0_i32, %c0_i32_0 : i32, i32
  }
  func.func @transform_3(%arg0: i32) -> (i32, i32) {
    %c0_i32 = arith.constant 0 : i32
    %c0_i32_0 = arith.constant 0 : i32
    %c0_i32_1 = arith.constant 0 : i32
    return %c0_i32, %c0_i32_0 : i32, i32
  }
  func.func @transform_4(%arg0: i32) -> (i32, i32) {
    %c0_i32 = arith.constant 0 : i32
    %c0_i32_0 = arith.constant 0 : i32
    %c0_i32_1 = arith.constant 0 : i32
    return %c0_i32, %c0_i32_0 : i32, i32
  }
  func.func @transform_5(%arg0: i32) -> (i32, i32) {
    %c0_i32 = arith.constant 0 : i32
    %c0_i32_0 = arith.constant 0 : i32
    return %arg0, %c0_i32 : i32, i32
  }
  func.func @transform_6(%arg0: i32) -> (i32, i32) {
    %c0_i32 = arith.constant 0 : i32
    %c0_i32_0 = arith.constant 0 : i32
    return %arg0, %c0_i32 : i32, i32
  }
  func.func @transform_7(%arg0: i32) -> (i32, i32) {
    %c0_i32 = arith.constant 0 : i32
    %c0_i32_0 = arith.constant 0 : i32
    return %arg0, %c0_i32 : i32, i32
  }
  func.func @transform_8(%arg0: i32) -> (i32, i32) {
    %c0_i32 = arith.constant 0 : i32
    %c0_i32_0 = arith.constant 0 : i32
    return %arg0, %c0_i32 : i32, i32
  }
}

module attributes {stable_mosaic.version = 11 : i64} {
  func.func @_encoder_kernel(%arg0: i32, %arg1: memref<16x32xf32, #tpu.memory_space<vmem>>, %arg2: memref<32x128xf32, #tpu.memory_space<vmem>>, %arg3: memref<1x128xf32, #tpu.memory_space<vmem>>, %arg4: memref<128x256xf32, #tpu.memory_space<vmem>>, %arg5: memref<1x256xf32, #tpu.memory_space<vmem>>, %arg6: memref<16x16xf32, #tpu.memory_space<vmem>>, %arg7: memref<16x16xf32, #tpu.memory_space<vmem>>, %arg8: memref<16x16xf32, #tpu.memory_space<vmem>>, %arg9: memref<16x16xf32, #tpu.memory_space<vmem>>) attributes {dimension_semantics = [#tpu.dimension_semantics<parallel>], iteration_bounds = array<i64: 2>, scalar_prefetch = 0 : i64, scratch_operands = 0 : i64, tpu.core_type = #tpu.core_type<tc>, window_params = [{transform_indices = @transform_0, window_bounds = array<i64: 16, 32>}, {pipeline_mode = #tpu.pipeline_mode<synchronous>, transform_indices = @transform_1, window_bounds = array<i64: 32, 128>}, {pipeline_mode = #tpu.pipeline_mode<synchronous>, transform_indices = @transform_2, window_bounds = array<i64: 1, 128>}, {pipeline_mode = #tpu.pipeline_mode<synchronous>, transform_indices = @transform_3, window_bounds = array<i64: 128, 256>}, {pipeline_mode = #tpu.pipeline_mode<synchronous>, transform_indices = @transform_4, window_bounds = array<i64: 1, 256>}, {transform_indices = @transform_5, window_bounds = array<i64: 16, 16>}, {transform_indices = @transform_6, window_bounds = array<i64: 16, 16>}, {transform_indices = @transform_7, window_bounds = array<i64: 16, 16>}, {transform_indices = @transform_8, window_bounds = array<i64: 16, 16>}]} {
    %c0 = arith.constant 0 : index
    %c0_0 = arith.constant 0 : index
    %0 = vector.load %arg1[%c0, %c0_0] : memref<16x32xf32, #tpu.memory_space<vmem>>, vector<16x32xf32>
    %c0_1 = arith.constant 0 : index
    %c0_2 = arith.constant 0 : index
    %1 = vector.load %arg2[%c0_1, %c0_2] : memref<32x128xf32, #tpu.memory_space<vmem>>, vector<32x128xf32>
    %cst = arith.constant dense<0.000000e+00> : vector<16x128xf32>
    %2 = tpu.matmul %0, %1, %cst {dimension_numbers = #tpu.dot_dimension_numbers<[1], [0], [0], [1], [0, 0, 1, 1], [], []>} : vector<16x32xf32>, vector<32x128xf32>, vector<16x128xf32> -> vector<16x128xf32>
    %c0_3 = arith.constant 0 : index
    %c0_4 = arith.constant 0 : index
    %3 = vector.load %arg3[%c0_3, %c0_4] : memref<1x128xf32, #tpu.memory_space<vmem>>, vector<1x128xf32>
    %4 = vector.broadcast %3 : vector<1x128xf32> to vector<16x128xf32>
    %5 = arith.addf %2, %4 : vector<16x128xf32>
    %c0_5 = arith.constant 0 : index
    %c0_6 = arith.constant 0 : index
    %6 = vector.load %arg4[%c0_5, %c0_6] : memref<128x256xf32, #tpu.memory_space<vmem>>, vector<128x256xf32>
    %cst_7 = arith.constant dense<0.000000e+00> : vector<16x256xf32>
    %7 = tpu.matmul %5, %6, %cst_7 {dimension_numbers = #tpu.dot_dimension_numbers<[1], [0], [0], [1], [0, 0, 1, 1], [], []>} : vector<16x128xf32>, vector<128x256xf32>, vector<16x256xf32> -> vector<16x256xf32>
    %c0_8 = arith.constant 0 : index
    %c0_9 = arith.constant 0 : index
    %8 = vector.load %arg5[%c0_8, %c0_9] : memref<1x256xf32, #tpu.memory_space<vmem>>, vector<1x256xf32>
    %9 = vector.broadcast %8 : vector<1x256xf32> to vector<16x256xf32>
    %10 = arith.addf %7, %9 : vector<16x256xf32>
    %11 = vector.extract_strided_slice %10 {offsets = [0, 0], sizes = [16, 16], strides = [1, 1]} : vector<16x256xf32> to vector<16x16xf32>
    %cst_10 = arith.constant 5.000000e-01 : f32
    %12 = vector.broadcast %cst_10 : f32 to vector<16x16xf32>
    %13 = arith.mulf %12, %11 : vector<16x16xf32>
    %14 = math.exp %13 : vector<16x16xf32>
    %15 = vector.extract_strided_slice %10 {offsets = [0, 128], sizes = [16, 16], strides = [1, 1]} : vector<16x256xf32> to vector<16x16xf32>
    %c0_11 = arith.constant 0 : index
    %c0_12 = arith.constant 0 : index
    %16 = vector.load %arg6[%c0_11, %c0_12] : memref<16x16xf32, #tpu.memory_space<vmem>>, vector<16x16xf32>
    %17 = arith.mulf %16, %15 : vector<16x16xf32>
    %18 = arith.addf %17, %14 : vector<16x16xf32>
    %c0_13 = arith.constant 0 : index
    %c0_14 = arith.constant 0 : index
    %19 = vector.load %arg7[%c0_13, %c0_14] : memref<16x16xf32, #tpu.memory_space<vmem>>, vector<16x16xf32>
    tpu.vector_store %arg7[%c0_13, %c0_14], %18 {strides = array<i32>} : memref<16x16xf32, #tpu.memory_space<vmem>>, vector<16x16xf32>,
    %c0_15 = arith.constant 0 : index
    %c0_16 = arith.constant 0 : index
    %20 = vector.load %arg8[%c0_15, %c0_16] : memref<16x16xf32, #tpu.memory_space<vmem>>, vector<16x16xf32>
    tpu.vector_store %arg8[%c0_15, %c0_16], %14 {strides = array<i32>} : memref<16x16xf32, #tpu.memory_space<vmem>>, vector<16x16xf32>,
    %c0_17 = arith.constant 0 : index
    %c0_18 = arith.constant 0 : index
    %21 = vector.load %arg9[%c0_17, %c0_18] : memref<16x16xf32, #tpu.memory_space<vmem>>, vector<16x16xf32>
    tpu.vector_store %arg9[%c0_17, %c0_18], %15 {strides = array<i32>} : memref<16x16xf32, #tpu.memory_space<vmem>>, vector<16x16xf32>,
    return
  }
  func.func @transform_0(%arg0: i32) -> (i32, i32) {
    %c0_i32 = arith.constant 0 : i32
    %c0_i32_0 = arith.constant 0 : i32
    return %arg0, %c0_i32 : i32, i32
  }
  func.func @transform_1(%arg0: i32) -> (i32, i32) {
    %c0_i32 = arith.constant 0 : i32
    %c0_i32_0 = arith.constant 0 : i32
    %c0_i32_1 = arith.constant 0 : i32
    return %c0_i32, %c0_i32_0 : i32, i32
  }
  func.func @transform_2(%arg0: i32) -> (i32, i32) {
    %c0_i32 = arith.constant 0 : i32
    %c0_i32_0 = arith.constant 0 : i32
    %c0_i32_1 = arith.constant 0 : i32
    return %c0_i32, %c0_i32_0 : i32, i32
  }
  func.func @transform_3(%arg0: i32) -> (i32, i32) {
    %c0_i32 = arith.constant 0 : i32
    %c0_i32_0 = arith.constant 0 : i32
    %c0_i32_1 = arith.constant 0 : i32
    return %c0_i32, %c0_i32_0 : i32, i32
  }
  func.func @transform_4(%arg0: i32) -> (i32, i32) {
    %c0_i32 = arith.constant 0 : i32
    %c0_i32_0 = arith.constant 0 : i32
    %c0_i32_1 = arith.constant 0 : i32
    return %c0_i32, %c0_i32_0 : i32, i32
  }
  func.func @transform_5(%arg0: i32) -> (i32, i32) {
    %c0_i32 = arith.constant 0 : i32
    %c0_i32_0 = arith.constant 0 : i32
    return %arg0, %c0_i32 : i32, i32
  }
  func.func @transform_6(%arg0: i32) -> (i32, i32) {
    %c0_i32 = arith.constant 0 : i32
    %c0_i32_0 = arith.constant 0 : i32
    return %arg0, %c0_i32 : i32, i32
  }
  func.func @transform_7(%arg0: i32) -> (i32, i32) {
    %c0_i32 = arith.constant 0 : i32
    %c0_i32_0 = arith.constant 0 : i32
    return %arg0, %c0_i32 : i32, i32
  }
  func.func @transform_8(%arg0: i32) -> (i32, i32) {
    %c0_i32 = arith.constant 0 : i32
    %c0_i32_0 = arith.constant 0 : i32
    return %arg0, %c0_i32 : i32, i32
  }
}

</mosaic_0001>

<bundles_post_ra>
// kernel: tpu_custom_call.1
= control target key start
LH: loop header
LB: loop body
LE: loop exit
PB: predicated region body
PF: predicated region fallthrough
CT: control target
= control target key end

     0   :  { %s2314_s0 = inlined_call_operand.hbm [shape: f32[20,32], index: 0, kind: input, shape index: {}]   ;;  %s2315_s1 = inlined_call_operand.vmem [shape: f32[32,128], index: 1, kind: input, shape index: {}]   ;;  %s2316_s2 = inlined_call_operand.vmem [shape: f32[1,128], index: 2, kind: input, shape index: {}]   ;;  %s2317_s3 = inlined_call_operand.hbm [shape: f32[128,256], index: 3, kind: input, shape index: {}]   ;;  %s2318_s4 = inlined_call_operand.vmem [shape: f32[1,256], index: 4, kind: input, shape index: {}]   ;;  %s2319_s5 = inlined_call_operand.vmem [shape: f32[20,16], index: 5, kind: input, shape index: {}]   ;;  %s2320_s6 = inlined_call_operand.vmem [shape: f32[20,16], index: 6, kind: output, shape index: {0}]   ;;  %s2321_s7 = inlined_call_operand.vmem [shape: f32[20,16], index: 7, kind: output, shape index: {1}]   ;;  %s2322_s8 = inlined_call_operand.vmem [shape: f32[20,16], index: 8, kind: output, shape index: {2}]  }
   0x1   :  { %2326 = sst [smem:[#allocation11_spill]] %s2314_s0 }
   0x2   :  { %14 = vsyncpa [#allocation3], 0 }
   0x3   :  { %16 = vsyncpa [#allocation3 + $0x1], 0 }
   0x4   :  { %17 = vsyncpa [#allocation5], 0  ;;  %s2016_s27 = smov 0   ;;  %s2018_s28 = smov 0  }
   0x5   :  { %s2020_s29 = smov 0   ;;  %s2022_s30 = smov 0  }
   0x6 LB: > { %s2035_s9 = sadd.s32 4294967295, %s1866_s30   ;;  %s2038_s10 = sadd.s32 1, %s1866_s30   ;;  %s1866_s30 = sphi %s2022_s30, %s2344_s30   ;;  %s1862_s29 = sphi %s2020_s29, %s2343_s29   ;;  %s1858_s28 = sphi %s2018_s28, %s2342_s28   ;;  %s1854_s27 = sphi %s2016_s27, %s2341_s27  }
   0x7   : > { %s27_s11 = ssub.s32 %s1866_s30, %s2038_s10  ;;  %s30_s12 = sadd.s32 1, %s1862_s29 }
   0x8   : > { %p28_p0 = scmp.eq.s32.totalorder %s27_s11, 0  ;;  %p37_p1 = scmp.ne.s32.totalorder %s1862_s29, %s1858_s28 }
   0x9   : > { %p38_p2 = scmp.eq.s32.totalorder %s1866_s30, 0  ;;  %p43_p3 = scmp.ne.s32.totalorder %s1858_s28, %s1854_s27 }
   0xa   : > { %s2048_s13 = scalar_select %p28_p0, %s1862_s29, %s30_s12  }
   0xb   : > { %p2050_p4 = por %p38_p2, %p37_p1  ;;  %p2323_p5 = scmp.eq.s32.totalorder %s2035_s9, 0 }
   0xc   : > { %p177_p6 = scmp.eq.s32.totalorder %s2035_s9, 1  ;;  %p1296_p7 = scmp.ge.s32.totalorder %s1866_s30, 1 }
   0xd   : > { %s2327_s14 = scalar_select %p2050_p4, 1, 0 }
   0xe   : > { %p2059_p8 = por %p2323_p5, %p43_p3  ;;  %p242_p9 = scmp.lt.s32.totalorder %s1866_s30, 3 }
   0xf   : > { %p2064_p10 = por %p177_p6, %p37_p1  ;;  %s1964_s18 = smov [#allocation4]  }
  0x10   : > { %s2328_s15 = scalar_select %p2059_p8, 1, 0 }
  0x11   : > { %s2329_s16 = scalar_select %p2064_p10, 1, 0 }
  0x12   : > { %p2068_p11 = pnand %p1296_p7, %p242_p9  ;;  %s260_s19 = sshll.u32 %s1964_s18, 4  ;;  %s261_s19 = int_to_ptr.vmem [resolvable:$true] %s260_s19 }
  0x13   : > { %s1676_s23 = scalar_lea.hbm %s2317_s3, 4096 }
  0x14   : > { %s2330_s17 = scalar_select %p2068_p11, 1, 0 }
  0x15   : > { %p1436_p12 = pneg %p2068_p11  ;;  %p1677_p0 = scmp.ne.s32.totalorder %s2317_s3, %s1676_s23 }
  0x16   : > { %p1683_p6 = scmp.lt.u32.totalorder %s1676_s23, %s2317_s3 }
  0x17   : > { %p2076_p13 = pnand %p1436_p12, %p2323_p5 }
  0x19   : > { %p1678_p1 = pneg %p2076_p13 }
  0x1b   : > { %p1679_p2 = pnand %p1678_p1, %p1677_p0 }
  0x1d   : > { %p1680_p3 = pneg %p1679_p2 }
  0x1f   : > { %p1685_p7 = pnand %p1683_p6, %p1680_p3 }
  0x21   : > { %1688 = shalt.err (!%p1685_p7)
}
  0x22   : > { %s1689_s11 = scalar_lea.vmem %s261_s19, 4096  ;;  %p1697_p10 = scmp.lt.s32.totalorder %s261_s19, %s261_s19 }
  0x23   : > { %p1690_p9 = scmp.ne.s32.totalorder %s261_s19, %s1689_s11  ;;  %p1698_p8 = scmp.lt.s32.totalorder %s1689_s11, %s1689_s11 }
  0x25   : > { %p1692_p12 = pnand %p1690_p9, %p1678_p1  ;;  %p1699_p11 = por %p1698_p8, %p1697_p10 }
  0x27   : > { %p1693_p5 = pneg %p1692_p12 }
  0x29   : > { %p1700_p4 = pnand %p1699_p11, %p1693_p5 }
  0x2b   : > { %1703 = shalt.err (!%p1700_p4)
}
  0x2c   : > { %s1965_s12 = smov 256   ;;  %s1966_s18 = smov 16  }
  0x2d   : > { %1439 = dma.hbm_to_vmem [thread:$0]  (!%p2076_p13), %s2317_s3, 4096, %s261_s19, [#allocation5], %s1965_s12, %s1965_s12, %s1966_s18  }
  0x2e   : > { %p1298_p0 = scmp.ge.s32.totalorder %s1866_s30, 2 }
  0x2f   : > { %p2332_p2 = scmp.ne.s32.totalorder (!%p1298_p0), %s2327_s14, 0 }
  0x30   : > { %273 = sbr.rel (%p1298_p0) target bundleno = 95 (0x5f), region = 32 }
  0x37   : > { %276 = sbr.rel (!%p2332_p2) target bundleno = 95 (0x5f), region = 36  ;;  %s277_s23 = sand.u32 (%p2332_p2), 1, %s1862_s29  }
  0x38   : > { %s1300_s24 = sshll.u32 (%p2332_p2), %s1866_s30, 1  ;;  %s1299_s25 = sshll.u32 (%p2332_p2), %s277_s23, 4 }
  0x39   : > { %s283_s26 = ssub.s32 (%p2332_p2), 3, %s1300_s24  ;;  %s2104_s11 = scalar_lea.sflag (%p2332_p2), [#allocation3], %s277_s23 }
  0x3a   : > { %p284_p4 = scmp.lt.s32.totalorder (%p2332_p2), %s283_s26, 2  ;;  %s281_s19 = scalar_lea.vmem (%p2332_p2), [#allocation2], %s1299_s25 }
  0x3e   : > { %s2346_s26 = smov (!%p284_p4, %s283_s26), 2 }
  0x3f   : > { %s2101_s27 = sshll.u32 %s2346_s26, 7 }
  0x40   : > { %s288_s20 = ssub.s32 256, %s2101_s27 }
  0x41   : > { %289 = vsyncadd %s2104_s11, %s288_s20  ;;  %p1302_p5 = scmp.ne.s32.totalorder %s2101_s27, 0  ;;  %s1364_s14 = sshll.u32 %s1866_s30, 8 }
  0x42   : > { %s2333_s0 = sld [smem:[#allocation11_spill]]  ;;  %s294_s22 = sshll.u32 %s281_s19, 4  ;;  %s2114_s22 = int_to_ptr.vmem [resolvable:$true] %s294_s22 }
  0x48   : > { %s2112_s21 = scalar_lea.hbm %s2333_s0, %s1364_s14  ;;  %s1708_s30 = scalar_lea.hbm %s2333_s0, 384 }
  0x49   : > { %s1704_s23 = scalar_lea.hbm %s2112_s21, %s2101_s27  ;;  %p1709_p13 = scmp.lt.u32.totalorder %s2112_s21, %s2333_s0 }
  0x4a   : > { %p1705_p8 = scmp.ne.s32.totalorder %s2112_s21, %s1704_s23  ;;  %p1710_p1 = scmp.lt.u32.totalorder %s1708_s30, %s1704_s23 }
  0x4b   : > { %p1712_p6 = scmp.lt.u32.totalorder %s1704_s23, %s2112_s21 }
  0x4c   : > { %p1706_p10 = pnand %p1705_p8, %p1302_p5  ;;  %p1711_p3 = por %p1710_p1, %p1709_p13 }
  0x4e   : > { %p1707_p11 = pneg %p1706_p10  ;;  %p1713_p7 = por %p1712_p6, %p1711_p3 }
  0x50   : > { %p1714_p9 = pnand %p1713_p7, %p1707_p11 }
  0x52   : > { %1717 = shalt.err (!%p1714_p9)
}
  0x53   : > { %s1718_s19 = scalar_lea.vmem %s2114_s22, %s2101_s27  ;;  %s1967_s14 = smov [#allocation2]  }
  0x54   : > { %p1719_p12 = scmp.ne.s32.totalorder %s2114_s22, %s1718_s19  ;;  %s1722_s12 = sshll.u32 %s1967_s14, 4  ;;  %s1723_s12 = int_to_ptr.vmem [resolvable:$false] %s1722_s12 }
  0x55   : > { %s1724_s18 = scalar_lea.vmem %s1723_s12, 512  ;;  %p1725_p4 = scmp.lt.s32.totalorder %s2114_s22, %s1723_s12 }
  0x56   : > { %p1720_p0 = pnand %p1719_p12, %p1302_p5  ;;  %p1726_p8 = scmp.lt.s32.totalorder %s1724_s18, %s1718_s19 }
  0x58   : > { %p1721_p2 = pneg %p1720_p0  ;;  %p1727_p10 = por %p1726_p8, %p1725_p4 }
  0x5a   : > { %p1728_p13 = pnand %p1727_p10, %p1721_p2 }
  0x5c   : > { %1731 = shalt.err (!%p1728_p13)
}
  0x5d   : > { %s1968_s23 = smov 128   ;;  %s1969_s24 = smov 8  }
  0x5e   : > { %300 = dma.hbm_to_vmem [thread:$0]  (%p1302_p5), %s2112_s21, %s2101_s27, %s2114_s22, %s2104_s11, %s1968_s23, %s1968_s23, %s1969_s24  }
  0x5f PF: > { %p2334_p11 = scmp.ne.s32.totalorder %s2330_s17, 0 }
  0x60   : > { %s325_s25 = sand.u32 (!%p2334_p11), 1, %s1858_s28   ;;  %p2335_p1 = scmp.ne.s32.totalorder (!%p2334_p11), %s2328_s15, 0 }
  0x61   : > { %323 = sbr.rel (%p2334_p11) target bundleno = 735 (0x2df), region = 44  ;;  %s2144_s30 = sshll.u32 (!%p2334_p11), %s325_s25, 4 }
  0x62   : > { %s326_s26 = scalar_lea.sflag (!%p2334_p11), [#allocation3], %s325_s25  ;;  %s329_s20 = scalar_lea.vmem (!%p2334_p11), [#allocation2], %s2144_s30 }
  0x68   : > { %1845 = dma.done.wait (%p2335_p1), %s326_s26, 256  }
  0x69   : > { %1847 = vsyncadd (%p2335_p1), %s326_s26, 4294967040  ;;  %p2336_p5 = scmp.eq.s32.totalorder %s2035_s9, 0 }
  0x6b   : > { %1849 = dma.done.wait (%p2336_p5), [#allocation5], 4096   ;;  %p2337_p3 = pmov %p2336_p5 }
  0x6c   : > { %vm429_vm0 = vcmask 261120   ;;  %v418_v0 = vld [vmem:[%s2315_s1] sm:$0xff]  ;;  %v419_v1 = vld [vmem:[%s2315_s1 + $0x8] sm:$0xff]  ;;  %v420_v2 = vld [vmem:[%s2315_s1 + $0x10] sm:$0xff]  ;;  %v1970_v56 = vmov 0.0   ;;  %v545_v62 = vlaneseq  ;;  %s2180_s25 = sshll.u32 %s2035_s9, 1 }
  0x6d   : > { %1851 = vsyncadd (%p2337_p3), [#allocation5], 4294963200  ;;  %v1391_v3 = vpack.c.bf16 %v419_v1, %v418_v0  ;;  %v421_v4 = vld [vmem:[%s2315_s1 + $0x18] sm:$0xff]  ;;  %v416_v5 = vld [vmem:[%s329_s20] sm:$0xff]  ;;  %619 = vmatprep.mubr.f32.mxu1 %v1970_v56  ;;  %p392_p6 = scmp.lt.s32.totalorder %s2180_s25, 2  ;;  %vm644_vm1 = vcmask 130048  }
  0x6e   : > { %v1395_v6 = vpack.c.bf16 %v421_v4, %v420_v2  ;;  %1388 = vmatprep.mubr.msk.f32.mxu0 %vm429_vm0, %v416_v5  ;;  %v512_v7 = vld [vmem:[#allocation4 + $0x8] sm:$0xff]  ;;  %v514_v8 = vld [vmem:[#allocation4 + $0x18] sm:$0xff]  ;;  %v511_v9 = vld [vmem:[#allocation4] sm:$0xff]  ;;  %v546_v63 = vshrl.u32 %v545_v62, 7  ;;  %s2195_s22 = scalar_lea.vmem [#allocation7], %s2144_s30   ;;  %s2200_s19 = scalar_lea.vmem [#allocation6], %s2144_s30  }
  0x6f   : > { %1392 = vmatprep.subr.bf16.mxu0 %v1391_v3  ;;  %v1399_v10 = vpack.c.bf16 %v514_v8, %v512_v7  ;;  %v513_v11 = vld [vmem:[#allocation4 + $0x10] sm:$0xff]  ;;  %v516_v12 = vld [vmem:[#allocation4 + $0x28] sm:$0xff]  ;;  %v518_v13 = vld [vmem:[#allocation4 + $0x38] sm:$0xff]  ;;  %s393_s26 = scalar_select %p392_p6, %s2180_s25, 2 }
  0x70   : > { %1394 = vmatpush3.bf16.msra.mxu0 %v1391_v3  ;;  %v1401_v14 = vpack.c.bf16 %v513_v11, %v511_v9  ;;  %v1403_v15 = vpack.c.bf16 %v518_v13, %v516_v12  ;;  %v515_v16 = vld [vmem:[#allocation4 + $0x20] sm:$0xff]  ;;  %v517_v17 = vld [vmem:[#allocation4 + $0x30] sm:$0xff]  ;;  %v520_v18 = vld [vmem:[#allocation4 + $0x48] sm:$0xff]  ;;  %v547_v0 = vsub.s32 0, %v546_v63  ;;  %v551_v2 = vsub.s32 1, %v546_v63  ;;  %p2338_p7 = scmp.ne.s32.totalorder %s2329_s16, 0 }
  0x71   : > { %1396 = vmatprep.subr.bf16.mxu0 %v1395_v6  ;;  %1400 = vmatprep.subr.bf16.mxu1 %v1399_v10  ;;  %v522_v19 = vld [vmem:[#allocation4 + $0x58] sm:$0xff]  ;;  %v1405_v20 = vpack.c.bf16 %v517_v17, %v515_v16  ;;  %v519_v22 = vld [vmem:[#allocation4 + $0x40] sm:$0xff]  ;;  %v521_v23 = vld [vmem:[#allocation4 + $0x50] sm:$0xff]  ;;  %s1313_s17 = sshll.u32 %s393_s26, 3  ;;  %s667_s15 = ssub.s32 (%p2338_p7), 3, %s2180_s25 }
  0x72   : > { %1402 = vmatpush1.bf16.msra.mxu1 %v1401_v14  ;;  %v1407_v21 = vpack.c.bf16 %v522_v19, %v520_v18  ;;  %v417_v24 = vld [vmem:[%s329_s20 + $0x8] sm:$0xff]  ;;  %v1409_v27 = vpack.c.bf16 %v521_v23, %v519_v22  ;;  %v523_v29 = vld [vmem:[#allocation4 + $0x60] sm:$0xff]  ;;  %v525_v30 = vld [vmem:[#allocation4 + $0x70] sm:$0xff]  ;;  %s2185_s20 = scalar_lea.vmem [#allocation8], %s2144_s30   ;;  %s395_s21 = scalar_lea.vmem %s2319_s5, %s1313_s17 }
  0x73   : > { %1404 = vmatprep.subr.bf16.mxu1 %v1403_v15  ;;  %v524_v25 = vld [vmem:[#allocation4 + $0x68] sm:$0xff]  ;;  %v526_v26 = vld [vmem:[#allocation4 + $0x78] sm:$0xff]  ;;  %v1413_v33 = vpack.c.bf16 %v525_v30, %v523_v29  ;;  %v527_v35 = vld [vmem:[#allocation4 + $0x80] sm:$0xff]  ;;  %s1365_s14 = sshll.u32 (%p2338_p7), %s2035_s9, 4  ;;  %p668_p9 = scmp.lt.s32.totalorder (%p2338_p7), %s667_s15, 2 }
  0x74   : > { %1398 = vmatpush3.bf16.msra.mxu0 %v1395_v6  ;;  %v1411_v28 = vpack.c.bf16 %v526_v26, %v524_v25  ;;  %v528_v31 = vld [vmem:[#allocation4 + $0x88] sm:$0xff]  ;;  %v530_v32 = vld [vmem:[#allocation4 + $0x98] sm:$0xff]  ;;  %v529_v36 = vld [vmem:[#allocation4 + $0x90] sm:$0xff]  ;;  %s2215_s18 = scalar_lea.vmem (%p2338_p7), %s2320_s6, %s1365_s14  }
  0x75   : > { %v1415_v34 = vpack.c.bf16 %v530_v32, %v528_v31  ;;  %v532_v37 = vld [vmem:[#allocation4 + $0xa8] sm:$0xff]  ;;  %v534_v38 = vld [vmem:[#allocation4 + $0xb8] sm:$0xff]  ;;  %v1417_v39 = vpack.c.bf16 %v529_v36, %v527_v35  ;;  %v531_v41 = vld [vmem:[#allocation4 + $0xa0] sm:$0xff] }
  0x76   : > { %1406 = vmatpush1.bf16.msra.mxu1 %v1405_v20  ;;  %v1419_v40 = vpack.c.bf16 %v534_v38, %v532_v37  ;;  %v533_v42 = vld [vmem:[#allocation4 + $0xb0] sm:$0xff]  ;;  %v536_v43 = vld [vmem:[#allocation4 + $0xc8] sm:$0xff]  ;;  %v538_v44 = vld [vmem:[#allocation4 + $0xd8] sm:$0xff] }
  0x77   : > { %1389 = vmatmul.mubr.msk.f32.vlgmr.msra.gmra.mrb[0].mxu0 %vm429_vm0, %v417_v24  ;;  %1408 = vmatprep.subr.bf16.mxu1 %v1407_v21  ;;  %v1421_v45 = vpack.c.bf16 %v533_v42, %v531_v41  ;;  %v1423_v46 = vpack.c.bf16 %v538_v44, %v536_v43  ;;  %v535_v47 = vld [vmem:[#allocation4 + $0xc0] sm:$0xff]  ;;  %v537_v48 = vld [vmem:[#allocation4 + $0xd0] sm:$0xff]  ;;  %v540_v50 = vld [vmem:[#allocation4 + $0xe8] sm:$0xff] }
  0x78   : > { %v1425_v49 = vpack.c.bf16 %v537_v48, %v535_v47  ;;  %v542_v51 = vld [vmem:[#allocation4 + $0xf8] sm:$0xff]  ;;  %v539_v53 = vld [vmem:[#allocation4 + $0xe0] sm:$0xff]  ;;  %v541_v54 = vld [vmem:[#allocation4 + $0xf0] sm:$0xff] }
  0x79   : > { %v1427_v52 = vpack.c.bf16 %v542_v51, %v540_v50  ;;  %v1429_v55 = vpack.c.bf16 %v541_v54, %v539_v53  ;;  %v1314_v57 = vld [vmem:[%s2316_s2] ss:$0 sm:$0xff]  ;;  %v639_v20 = vld [vmem:[%s395_s21 + $0x8] sm:$0xff] }
  0x7a   : > { %1410 = vmatpush1.bf16.msra.mxu1 %v1409_v27  ;;  %v543_v1 = vld [vmem:[%s2318_s4] sm:$0x3] }
  0x7b   : > { %1412 = vmatprep.subr.bf16.mxu1 %v1411_v28  ;;  %v548_v3 = vrot.slane %v543_v1, %v547_v0  ;;  %v552_v4 = vrot.slane %v543_v1, %v551_v2  ;;  %v638_v17 = vld [vmem:[%s395_s21] sm:$0xff] }
  0x7e   : > { %1414 = vmatpush1.bf16.msra.mxu1 %v1413_v33 }
  0x7f   : > { %1416 = vmatprep.subr.bf16.mxu1 %v1415_v34 }
  0x82   : > { %1418 = vmatpush1.bf16.msra.mxu1 %v1417_v39 }
  0x83   : > { %1420 = vmatprep.subr.bf16.mxu1 %v1419_v40 }
  0x86   : > { %1422 = vmatpush1.bf16.msra.mxu1 %v1421_v45 }
  0x87   : > { %1424 = vmatprep.subr.bf16.mxu1 %v1423_v46 }
  0x8a   : > { %1426 = vmatpush1.bf16.msra.mxu1 %v1425_v49 }
  0x8b   : > { %1428 = vmatprep.subr.bf16.mxu1 %v1427_v52 }
  0x8e   : > { %1430 = vmatpush1.bf16.msra.mxu1 %v1429_v55 }
 0x14a   : > { %v1390_v58 = vpop.f32.mrb[0].mxu0 }
 0x14b   : > { %v502_v59 = vpop.f32.mrb[1].mxu0  ;;  %v508_v61 = vadd.f32 %v1390_v58, %v1314_v57 }
 0x14c   : > { %v503_v60 = vadd.f32 %v1314_v57, %v502_v59 }
 0x14e   : > { %620 = vmatmul.mubr.f32.vlgmr.msra.gmra.mrb[0].mxu1 %v503_v60 }
 0x14f   : > { %625 = vmatprep.mubr.f32.mxu1 %v1970_v56 }
 0x152   : > { %626 = vmatmul.mubr.f32.gmra.mrb[2].mxu1 %v508_v61 }
 0x221   : > { %v621_v5 = vpop.f32.mrb[0].mxu1 }
 0x222   : > { %v622_v6 = vadd.f32 %v621_v5, %v548_v3  ;;  %v623_v7 = vpop.f32.mrb[1].mxu1 }
 0x223   : > { %v624_v8 = vadd.f32 %v623_v7, %v552_v4 }
 0x224   : > { %v632_v9 = vmul.f32 0.5, %v622_v6 }
 0x225   : > { %649 = vst.msk [vmem:[%s2185_s20] sm:$0xff] %vm644_vm1, %v624_v8  ;;  %v627_v10 = vpop.f32.mrb[2].mxu1  ;;  %v640_v18 = vmul.f32 %v638_v17, %v624_v8 }
 0x226   : > { %v634_v11 = vmul.f32 1.442695, %v632_v9  ;;  %v628_v12 = vadd.f32 %v627_v10, %v548_v3  ;;  %v629_v13 = vpop.f32.mrb[3].mxu1 }
 0x227   : > { %v630_v14 = vadd.f32 %v629_v13, %v552_v4 }
 0x228   : > { %1672 = vpow2.f32 %v634_v11  ;;  %v633_v15 = vmul.f32 0.5, %v628_v12 }
 0x229   : > { %650 = vst.msk [vmem:[%s2185_s20 + $0x8] sm:$0xff] %vm644_vm1, %v630_v14  ;;  %v641_v22 = vmul.f32 %v639_v20, %v630_v14 }
 0x22a   : > { %v636_v16 = vmul.f32 1.442695, %v633_v15 }
 0x22c   : > { %1674 = vpow2.f32 %v636_v16 }
 0x232   : > { %v1673_v19 = vpop.eup %1672 }
 0x233   : > { %v642_v21 = vadd.f32 %v1673_v19, %v640_v18  ;;  %647 = vst.msk [vmem:[%s2195_s22] sm:$0xff] %vm644_vm1, %v1673_v19  ;;  %665 = sbr.rel (!%p2338_p7) target bundleno = 619 (0x26b), region = 56 }
 0x235   : > { %645 = vst.msk [vmem:[%s2200_s19] sm:$0xff] %vm644_vm1, %v642_v21 }
 0x236   : > { %v1675_v23 = vpop.eup %1674 }
 0x237   : > { %648 = vst.msk [vmem:[%s2195_s22 + $0x8] sm:$0xff] %vm644_vm1, %v1675_v23  ;;  %v643_v24 = vadd.f32 %v1675_v23, %v641_v22 }
 0x239   : > { %646 = vst.msk [vmem:[%s2200_s19 + $0x8] sm:$0xff] %vm644_vm1, %v643_v24 }
 0x23a   : > { %s2348_s15 = smov (!%p668_p9, %s667_s15), 2 }
 0x23b   : > { %s1321_s23 = sshll.u32 %s2348_s15, 7 }
 0x23c   : > { %p1324_p12 = scmp.eq.s32.totalorder %s1321_s23, 0 }
 0x23d   : > { %s2221_s24 = sshrl.u32 (!%p1324_p12), %s2348_s15, 1 }
 0x23e   : > { %676 = sbr.rel (%p1324_p12) target bundleno = 619 (0x26b), region = 60  ;;  %p1325_p0 = scmp.le.s32.totalorder (!%p1324_p12), %s2221_s24, 0 }
 0x245   : > { %1159 = sbr.rel (%p1325_p0) target bundleno = 598 (0x256), region = 289  ;;  %s1868_s26 = smov (!%p1325_p0), %s2215_s18  }
 0x246   : > { %s1872_s17 = smov (!%p1325_p0), %s2200_s19   ;;  %s1876_s27 = smov (!%p1325_p0), 0  }
 0x247   : > { %s1880_s11 = smov (!%p1325_p0), 0  }
 0x24c LB: >> { %v740_v25 = vld [vmem:[%s1874_s17] sm:$0xff]  ;;  %v742_v26 = vld [vmem:[%s1874_s17 + $0x8] sm:$0xff]  ;;  %s744_s21 = sadd.s32 1, %s1878_s27  ;;  %s734_s11 = sadd.s32 1, %s1882_s11   ;;  %s1882_s11 = sphi %s1880_s11, %s734_s11   ;;  %s1878_s27 = sphi %s1876_s27, %s1877_s27   ;;  %s1874_s17 = sphi %s1872_s17, %s749_s17   ;;  %s1870_s26 = sphi %s1868_s26, %s750_s26  }
 0x24d   : >> { %741 = vst [vmem:[%s1870_s26] sm:$0xff] %v740_v25  ;;  %743 = vst [vmem:[%s1870_s26 + $0x8] sm:$0xff] %v742_v26  ;;  %p745_p2 = scmp.ge.s32.totalorder %s744_s21, %s2221_s24  ;;  %p733_p4 = scmp.ge.s32.totalorder %s734_s11, %s2221_s24 }
 0x24f   : >> { %s2350_s21 = smov (%p745_p2, %s744_s21), 0  ;;  %736 = sbr.rel (!%p733_p4) target bundleno = 588 (0x24c), region = 295 }
 0x250   : >> { %s1326_s14 = sshll.u32 %s2350_s21, 4  ;;  %s1877_s27 = smov %s2350_s21  }
 0x251   : >> { %s749_s17 = scalar_lea.vmem %s2200_s19, %s1326_s14 [#allocation6]   ;;  %s750_s26 = scalar_lea.vmem %s2215_s18, %s1326_s14  }
 0x256 PF: > { %s2231_s30 = sand.u32 1, %s2348_s15   ;;  %s1366_s12 = sshll.u32 %s2221_s24, 4 }
 0x257   : > { %s755_s23 = scalar_lea.vmem %s2200_s19, %s1366_s12 [#allocation6]   ;;  %s757_s27 = scalar_lea.vmem %s2215_s18, %s1366_s12  }
 0x258   : > { %p1331_p8 = scmp.le.s32.totalorder %s2231_s30, 0 }
 0x259   : > { %s1884_s14 = smov (!%p1331_p8), %s757_s27   ;;  %s1888_s0 = smov (!%p1331_p8), %s755_s23  }
 0x25a   : > { %1173 = sbr.rel (%p1331_p8) target bundleno = 619 (0x26b), region = 300  ;;  %s1892_s26 = smov (!%p1331_p8), 0  }
 0x25b   : > { %s1896_s17 = smov (!%p1331_p8), 0  }
 0x261 LB: >> { %v767_v27 = vld [vmem:[%s1890_s0] sm:$0xff]  ;;  %s769_s15 = sadd.s32 1, %s1894_s26  ;;  %s761_s17 = sadd.s32 1, %s1898_s17   ;;  %s1898_s17 = sphi %s1896_s17, %s761_s17   ;;  %s1894_s26 = sphi %s1892_s26, %s1893_s26   ;;  %s1890_s0 = sphi %s1888_s0, %s774_s0   ;;  %s1886_s14 = sphi %s1884_s14, %s775_s14  }
 0x262   : >> { %768 = vst [vmem:[%s1886_s14] sm:$0xff] %v767_v27  ;;  %p770_p10 = scmp.ge.s32.totalorder %s769_s15, %s2231_s30  ;;  %p760_p13 = scmp.ge.s32.totalorder %s761_s17, %s2231_s30 }
 0x264   : >> { %s2352_s15 = smov (%p770_p10, %s769_s15), 0  ;;  %763 = sbr.rel (!%p760_p13) target bundleno = 609 (0x261), region = 306 }
 0x265   : >> { %s1332_s19 = sshll.u32 %s2352_s15, 3  ;;  %s1893_s26 = smov %s2352_s15  }
 0x266   : >> { %s774_s0 = scalar_lea.vmem %s755_s23, %s1332_s19 [#allocation6]   ;;  %s775_s14 = scalar_lea.vmem %s757_s27, %s1332_s19  }
 0x26b PF: > { %p2339_p11 = scmp.ne.s32.totalorder %s2329_s16, 0 }
 0x26c   : > { %s783_s18 = ssub.s32 (%p2339_p11), 3, %s2180_s25  ;;  %s1368_s24 = sshll.u32 (%p2339_p11), %s2035_s9, 4 }
 0x26d   : > { %781 = sbr.rel (!%p2339_p11) target bundleno = 677 (0x2a5), region = 108  ;;  %p784_p1 = scmp.lt.s32.totalorder (%p2339_p11), %s783_s18, 2 }
 0x26e   : > { %s2246_s12 = scalar_lea.vmem (%p2339_p11), %s2321_s7, %s1368_s24  }
 0x274   : > { %s2354_s18 = smov (!%p784_p1, %s783_s18), 2 }
 0x275   : > { %s1335_s0 = sshll.u32 %s2354_s18, 7 }
 0x276   : > { %p1338_p5 = scmp.eq.s32.totalorder %s1335_s0, 0 }
 0x277   : > { %s2252_s30 = sshrl.u32 (!%p1338_p5), %s2354_s18, 1 }
 0x278   : > { %792 = sbr.rel (%p1338_p5) target bundleno = 677 (0x2a5), region = 112  ;;  %p1339_p3 = scmp.le.s32.totalorder (!%p1338_p5), %s2252_s30, 0 }
 0x27f   : > { %1187 = sbr.rel (%p1339_p3) target bundleno = 656 (0x290), region = 311  ;;  %s1900_s23 = smov (!%p1339_p3), %s2246_s12  }
 0x280   : > { %s1904_s27 = smov (!%p1339_p3), %s2195_s22   ;;  %s1908_s14 = smov (!%p1339_p3), 0  }
 0x281   : > { %s1912_s26 = smov (!%p1339_p3), 0  }
 0x286 LB: >> { %v856_v28 = vld [vmem:[%s1906_s27] sm:$0xff]  ;;  %v858_v29 = vld [vmem:[%s1906_s27 + $0x8] sm:$0xff]  ;;  %s860_s17 = sadd.s32 1, %s1910_s14  ;;  %s850_s26 = sadd.s32 1, %s1914_s26   ;;  %s1914_s26 = sphi %s1912_s26, %s850_s26   ;;  %s1910_s14 = sphi %s1908_s14, %s1909_s14   ;;  %s1906_s27 = sphi %s1904_s27, %s865_s27   ;;  %s1902_s23 = sphi %s1900_s23, %s866_s23  }
 0x287   : >> { %857 = vst [vmem:[%s1902_s23] sm:$0xff] %v856_v28  ;;  %859 = vst [vmem:[%s1902_s23 + $0x8] sm:$0xff] %v858_v29  ;;  %p861_p6 = scmp.ge.s32.totalorder %s860_s17, %s2252_s30  ;;  %p849_p7 = scmp.ge.s32.totalorder %s850_s26, %s2252_s30 }
 0x289   : >> { %s2356_s17 = smov (%p861_p6, %s860_s17), 0  ;;  %852 = sbr.rel (!%p849_p7) target bundleno = 646 (0x286), region = 317 }
 0x28a   : >> { %s1340_s15 = sshll.u32 %s2356_s17, 4  ;;  %s1909_s14 = smov %s2356_s17  }
 0x28b   : >> { %s865_s27 = scalar_lea.vmem %s2195_s22, %s1340_s15 [#allocation7]   ;;  %s866_s23 = scalar_lea.vmem %s2246_s12, %s1340_s15  }
 0x290 PF: > { %s2262_s19 = sand.u32 1, %s2354_s18   ;;  %s1369_s24 = sshll.u32 %s2252_s30, 4 }
 0x291   : > { %s871_s11 = scalar_lea.vmem %s2195_s22, %s1369_s24 [#allocation7]   ;;  %s873_s21 = scalar_lea.vmem %s2246_s12, %s1369_s24  }
 0x292   : > { %p1345_p9 = scmp.le.s32.totalorder %s2262_s19, 0 }
 0x293   : > { %s1916_s0 = smov (!%p1345_p9), %s873_s21   ;;  %s1920_s14 = smov (!%p1345_p9), %s871_s11  }
 0x294   : > { %1201 = sbr.rel (%p1345_p9) target bundleno = 677 (0x2a5), region = 322  ;;  %s1924_s23 = smov (!%p1345_p9), 0  }
 0x295   : > { %s1928_s27 = smov (!%p1345_p9), 0  }
 0x29b LB: >> { %v883_v30 = vld [vmem:[%s1922_s14] sm:$0xff]  ;;  %s885_s18 = sadd.s32 1, %s1926_s23  ;;  %s877_s27 = sadd.s32 1, %s1930_s27   ;;  %s1930_s27 = sphi %s1928_s27, %s877_s27   ;;  %s1926_s23 = sphi %s1924_s23, %s1925_s23   ;;  %s1922_s14 = sphi %s1920_s14, %s890_s14   ;;  %s1918_s0 = sphi %s1916_s0, %s891_s0  }
 0x29c   : >> { %884 = vst [vmem:[%s1918_s0] sm:$0xff] %v883_v30  ;;  %p886_p12 = scmp.ge.s32.totalorder %s885_s18, %s2262_s19  ;;  %p876_p0 = scmp.ge.s32.totalorder %s877_s27, %s2262_s19 }
 0x29e   : >> { %s2358_s18 = smov (%p886_p12, %s885_s18), 0  ;;  %879 = sbr.rel (!%p876_p0) target bundleno = 667 (0x29b), region = 328 }
 0x29f   : >> { %s1346_s22 = sshll.u32 %s2358_s18, 3  ;;  %s1925_s23 = smov %s2358_s18  }
 0x2a0   : >> { %s890_s14 = scalar_lea.vmem %s871_s11, %s1346_s22 [#allocation7]   ;;  %s891_s0 = scalar_lea.vmem %s873_s21, %s1346_s22  }
 0x2a5 PF: > { %p2340_p2 = scmp.ne.s32.totalorder %s2329_s16, 0 }
 0x2a6   : > { %s899_s12 = ssub.s32 (%p2340_p2), 3, %s2180_s25  ;;  %s1371_s30 = sshll.u32 (%p2340_p2), %s2035_s9, 4 }
 0x2a7   : > { %897 = sbr.rel (!%p2340_p2) target bundleno = 735 (0x2df), region = 160  ;;  %p900_p4 = scmp.lt.s32.totalorder (%p2340_p2), %s899_s12, 2 }
 0x2a8   : > { %s2277_s15 = scalar_lea.vmem (%p2340_p2), %s2322_s8, %s1371_s30  }
 0x2ae   : > { %s2360_s12 = smov (!%p900_p4, %s899_s12), 2 }
 0x2af   : > { %s1349_s24 = sshll.u32 %s2360_s12, 7 }
 0x2b0   : > { %p1352_p8 = scmp.eq.s32.totalorder %s1349_s24, 0 }
 0x2b1   : > { %s2283_s19 = sshrl.u32 (!%p1352_p8), %s2360_s12, 1 }
 0x2b2   : > { %908 = sbr.rel (%p1352_p8) target bundleno = 735 (0x2df), region = 164  ;;  %p1353_p10 = scmp.le.s32.totalorder (!%p1352_p8), %s2283_s19, 0 }
 0x2b9   : > { %1215 = sbr.rel (%p1353_p10) target bundleno = 714 (0x2ca), region = 333  ;;  %s1932_s9 = smov (!%p1353_p10), %s2277_s15  }
 0x2ba   : > { %s1936_s16 = smov (!%p1353_p10), %s2185_s20   ;;  %s1940_s25 = smov (!%p1353_p10), 0  }
 0x2bb   : > { %s1944_s11 = smov (!%p1353_p10), 0  }
 0x2c0 LB: >> { %v972_v31 = vld [vmem:[%s1938_s16] sm:$0xff]  ;;  %v974_v32 = vld [vmem:[%s1938_s16 + $0x8] sm:$0xff]  ;;  %s976_s21 = sadd.s32 1, %s1942_s25  ;;  %s966_s11 = sadd.s32 1, %s1946_s11   ;;  %s1946_s11 = sphi %s1944_s11, %s966_s11   ;;  %s1942_s25 = sphi %s1940_s25, %s1941_s25   ;;  %s1938_s16 = sphi %s1936_s16, %s981_s16   ;;  %s1934_s9 = sphi %s1932_s9, %s982_s9  }
 0x2c1   : >> { %973 = vst [vmem:[%s1934_s9] sm:$0xff] %v972_v31  ;;  %975 = vst [vmem:[%s1934_s9 + $0x8] sm:$0xff] %v974_v32  ;;  %p977_p13 = scmp.ge.s32.totalorder %s976_s21, %s2283_s19  ;;  %p965_p11 = scmp.ge.s32.totalorder %s966_s11, %s2283_s19 }
 0x2c3   : >> { %s2362_s21 = smov (%p977_p13, %s976_s21), 0  ;;  %968 = sbr.rel (!%p965_p11) target bundleno = 704 (0x2c0), region = 339 }
 0x2c4   : >> { %s1354_s0 = sshll.u32 %s2362_s21, 4  ;;  %s1941_s25 = smov %s2362_s21  }
 0x2c5   : >> { %s981_s16 = scalar_lea.vmem %s2185_s20, %s1354_s0 [#allocation8]   ;;  %s982_s9 = scalar_lea.vmem %s2277_s15, %s1354_s0  }
 0x2ca PF: > { %s2293_s14 = sand.u32 1, %s2360_s12   ;;  %s1372_s23 = sshll.u32 %s2283_s19, 4 }
 0x2cb   : > { %s987_s27 = scalar_lea.vmem %s2185_s20, %s1372_s23 [#allocation8]   ;;  %s989_s18 = scalar_lea.vmem %s2277_s15, %s1372_s23  }
 0x2cc   : > { %p1359_p1 = scmp.le.s32.totalorder %s2293_s14, 0 }
 0x2cd   : > { %s1948_s22 = smov (!%p1359_p1), %s989_s18   ;;  %s1952_s30 = smov (!%p1359_p1), %s987_s27  }
 0x2ce   : > { %1229 = sbr.rel (%p1359_p1) target bundleno = 735 (0x2df), region = 344  ;;  %s1956_s26 = smov (!%p1359_p1), 0  }
 0x2cf   : > { %s1960_s17 = smov (!%p1359_p1), 0  }
 0x2d5 LB: >> { %v999_v33 = vld [vmem:[%s1954_s30] sm:$0xff]  ;;  %s1001_s12 = sadd.s32 1, %s1958_s26  ;;  %s993_s17 = sadd.s32 1, %s1962_s17   ;;  %s1962_s17 = sphi %s1960_s17, %s993_s17   ;;  %s1958_s26 = sphi %s1956_s26, %s1957_s26   ;;  %s1954_s30 = sphi %s1952_s30, %s1006_s30   ;;  %s1950_s22 = sphi %s1948_s22, %s1007_s22  }
 0x2d6   : >> { %1000 = vst [vmem:[%s1950_s22] sm:$0xff] %v999_v33  ;;  %p1002_p5 = scmp.ge.s32.totalorder %s1001_s12, %s2293_s14  ;;  %p992_p3 = scmp.ge.s32.totalorder %s993_s17, %s2293_s14 }
 0x2d8   : >> { %s2364_s12 = smov (%p1002_p5, %s1001_s12), 0  ;;  %995 = sbr.rel (!%p992_p3) target bundleno = 725 (0x2d5), region = 350 }
 0x2d9   : >> { %s1360_s20 = sshll.u32 %s2364_s12, 3  ;;  %s1957_s26 = smov %s2364_s12  }
 0x2da   : >> { %s1006_s30 = scalar_lea.vmem %s987_s27, %s1360_s20 [#allocation8]   ;;  %s1007_s22 = scalar_lea.vmem %s989_s18, %s1360_s20  }
 0x2df PF: > { %p20_p6 = scmp.ge.s32.totalorder %s2038_s10, 4   ;;  %s2341_s27 = smov %s1858_s28 }
 0x2e0   : > { %s2342_s28 = smov %s1862_s29  ;;  %s2343_s29 = smov %s2048_s13 }
 0x2e1   : > { %s2344_s30 = smov %s2038_s10  ;;  %22 = sbr.rel (!%p20_p6) target bundleno = 6 (0x6), region = 361 }
 0x2e8   :  { %1037 = vsyncpa [#allocation3], 1 }
 0x2e9   :  { %1039 = vsyncpa [#allocation3 + $0x1], 1 }
 0x2ea   :  { %1040 = vsyncpa [#allocation5], 1 }

// kernel: tpu_custom_call.1
= control target key start
LH: loop header
LB: loop body
LE: loop exit
PB: predicated region body
PF: predicated region fallthrough
CT: control target
= control target key end

     0   :  { %s2314_s0 = inlined_call_operand.hbm [shape: f32[20,32], index: 0, kind: input, shape index: {}]   ;;  %s2315_s1 = inlined_call_operand.vmem [shape: f32[32,128], index: 1, kind: input, shape index: {}]   ;;  %s2316_s2 = inlined_call_operand.vmem [shape: f32[1,128], index: 2, kind: input, shape index: {}]   ;;  %s2317_s3 = inlined_call_operand.hbm [shape: f32[128,256], index: 3, kind: input, shape index: {}]   ;;  %s2318_s4 = inlined_call_operand.vmem [shape: f32[1,256], index: 4, kind: input, shape index: {}]   ;;  %s2319_s5 = inlined_call_operand.vmem [shape: f32[20,16], index: 5, kind: input, shape index: {}]   ;;  %s2320_s6 = inlined_call_operand.vmem [shape: f32[20,16], index: 6, kind: output, shape index: {0}]   ;;  %s2321_s7 = inlined_call_operand.vmem [shape: f32[20,16], index: 7, kind: output, shape index: {1}]   ;;  %s2322_s8 = inlined_call_operand.vmem [shape: f32[20,16], index: 8, kind: output, shape index: {2}]  }
   0x1   :  { %2326 = sst [smem:[#allocation11_spill]] %s2314_s0 }
   0x2   :  { %14 = vsyncpa [#allocation3], 0 }
   0x3   :  { %16 = vsyncpa [#allocation3 + $0x1], 0 }
   0x4   :  { %17 = vsyncpa [#allocation5], 0  ;;  %s2016_s27 = smov 0   ;;  %s2018_s28 = smov 0  }
   0x5   :  { %s2020_s29 = smov 0   ;;  %s2022_s30 = smov 0  }
   0x6 LB: > { %s2035_s9 = sadd.s32 4294967295, %s1866_s30   ;;  %s2038_s10 = sadd.s32 1, %s1866_s30   ;;  %s1866_s30 = sphi %s2022_s30, %s2344_s30   ;;  %s1862_s29 = sphi %s2020_s29, %s2343_s29   ;;  %s1858_s28 = sphi %s2018_s28, %s2342_s28   ;;  %s1854_s27 = sphi %s2016_s27, %s2341_s27  }
   0x7   : > { %s27_s11 = ssub.s32 %s1866_s30, %s2038_s10  ;;  %s30_s12 = sadd.s32 1, %s1862_s29 }
   0x8   : > { %p28_p0 = scmp.eq.s32.totalorder %s27_s11, 0  ;;  %p37_p1 = scmp.ne.s32.totalorder %s1862_s29, %s1858_s28 }
   0x9   : > { %p38_p2 = scmp.eq.s32.totalorder %s1866_s30, 0  ;;  %p43_p3 = scmp.ne.s32.totalorder %s1858_s28, %s1854_s27 }
   0xa   : > { %s2048_s13 = scalar_select %p28_p0, %s1862_s29, %s30_s12  }
   0xb   : > { %p2050_p4 = por %p38_p2, %p37_p1  ;;  %p2323_p5 = scmp.eq.s32.totalorder %s2035_s9, 0 }
   0xc   : > { %p177_p6 = scmp.eq.s32.totalorder %s2035_s9, 1  ;;  %p1296_p7 = scmp.ge.s32.totalorder %s1866_s30, 1 }
   0xd   : > { %s2327_s14 = scalar_select %p2050_p4, 1, 0 }
   0xe   : > { %p2059_p8 = por %p2323_p5, %p43_p3  ;;  %p242_p9 = scmp.lt.s32.totalorder %s1866_s30, 3 }
   0xf   : > { %p2064_p10 = por %p177_p6, %p37_p1  ;;  %s1964_s18 = smov [#allocation4]  }
  0x10   : > { %s2328_s15 = scalar_select %p2059_p8, 1, 0 }
  0x11   : > { %s2329_s16 = scalar_select %p2064_p10, 1, 0 }
  0x12   : > { %p2068_p11 = pnand %p1296_p7, %p242_p9  ;;  %s260_s19 = sshll.u32 %s1964_s18, 4  ;;  %s261_s19 = int_to_ptr.vmem [resolvable:$true] %s260_s19 }
  0x13   : > { %s1676_s23 = scalar_lea.hbm %s2317_s3, 4096 }
  0x14   : > { %s2330_s17 = scalar_select %p2068_p11, 1, 0 }
  0x15   : > { %p1436_p12 = pneg %p2068_p11  ;;  %p1677_p0 = scmp.ne.s32.totalorder %s2317_s3, %s1676_s23 }
  0x16   : > { %p1683_p6 = scmp.lt.u32.totalorder %s1676_s23, %s2317_s3 }
  0x17   : > { %p2076_p13 = pnand %p1436_p12, %p2323_p5 }
  0x19   : > { %p1678_p1 = pneg %p2076_p13 }
  0x1b   : > { %p1679_p2 = pnand %p1678_p1, %p1677_p0 }
  0x1d   : > { %p1680_p3 = pneg %p1679_p2 }
  0x1f   : > { %p1685_p7 = pnand %p1683_p6, %p1680_p3 }
  0x21   : > { %1688 = shalt.err (!%p1685_p7)
}
  0x22   : > { %s1689_s11 = scalar_lea.vmem %s261_s19, 4096  ;;  %p1697_p10 = scmp.lt.s32.totalorder %s261_s19, %s261_s19 }
  0x23   : > { %p1690_p9 = scmp.ne.s32.totalorder %s261_s19, %s1689_s11  ;;  %p1698_p8 = scmp.lt.s32.totalorder %s1689_s11, %s1689_s11 }
  0x25   : > { %p1692_p12 = pnand %p1690_p9, %p1678_p1  ;;  %p1699_p11 = por %p1698_p8, %p1697_p10 }
  0x27   : > { %p1693_p5 = pneg %p1692_p12 }
  0x29   : > { %p1700_p4 = pnand %p1699_p11, %p1693_p5 }
  0x2b   : > { %1703 = shalt.err (!%p1700_p4)
}
  0x2c   : > { %s1965_s12 = smov 256   ;;  %s1966_s18 = smov 16  }
  0x2d   : > { %1439 = dma.hbm_to_vmem [thread:$0]  (!%p2076_p13), %s2317_s3, 4096, %s261_s19, [#allocation5], %s1965_s12, %s1965_s12, %s1966_s18  }
  0x2e   : > { %p1298_p0 = scmp.ge.s32.totalorder %s1866_s30, 2 }
  0x2f   : > { %p2332_p2 = scmp.ne.s32.totalorder (!%p1298_p0), %s2327_s14, 0 }
  0x30   : > { %273 = sbr.rel (%p1298_p0) target bundleno = 95 (0x5f), region = 32 }
  0x37   : > { %276 = sbr.rel (!%p2332_p2) target bundleno = 95 (0x5f), region = 36  ;;  %s277_s23 = sand.u32 (%p2332_p2), 1, %s1862_s29  }
  0x38   : > { %s1300_s24 = sshll.u32 (%p2332_p2), %s1866_s30, 1  ;;  %s1299_s25 = sshll.u32 (%p2332_p2), %s277_s23, 4 }
  0x39   : > { %s283_s26 = ssub.s32 (%p2332_p2), 3, %s1300_s24  ;;  %s2104_s11 = scalar_lea.sflag (%p2332_p2), [#allocation3], %s277_s23 }
  0x3a   : > { %p284_p4 = scmp.lt.s32.totalorder (%p2332_p2), %s283_s26, 2  ;;  %s281_s19 = scalar_lea.vmem (%p2332_p2), [#allocation2], %s1299_s25 }
  0x3e   : > { %s2346_s26 = smov (!%p284_p4, %s283_s26), 2 }
  0x3f   : > { %s2101_s27 = sshll.u32 %s2346_s26, 7 }
  0x40   : > { %s288_s20 = ssub.s32 256, %s2101_s27 }
  0x41   : > { %289 = vsyncadd %s2104_s11, %s288_s20  ;;  %p1302_p5 = scmp.ne.s32.totalorder %s2101_s27, 0  ;;  %s1364_s14 = sshll.u32 %s1866_s30, 8 }
  0x42   : > { %s2333_s0 = sld [smem:[#allocation11_spill]]  ;;  %s294_s22 = sshll.u32 %s281_s19, 4  ;;  %s2114_s22 = int_to_ptr.vmem [resolvable:$true] %s294_s22 }
  0x48   : > { %s2112_s21 = scalar_lea.hbm %s2333_s0, %s1364_s14  ;;  %s1708_s30 = scalar_lea.hbm %s2333_s0, 384 }
  0x49   : > { %s1704_s23 = scalar_lea.hbm %s2112_s21, %s2101_s27  ;;  %p1709_p13 = scmp.lt.u32.totalorder %s2112_s21, %s2333_s0 }
  0x4a   : > { %p1705_p8 = scmp.ne.s32.totalorder %s2112_s21, %s1704_s23  ;;  %p1710_p1 = scmp.lt.u32.totalorder %s1708_s30, %s1704_s23 }
  0x4b   : > { %p1712_p6 = scmp.lt.u32.totalorder %s1704_s23, %s2112_s21 }
  0x4c   : > { %p1706_p10 = pnand %p1705_p8, %p1302_p5  ;;  %p1711_p3 = por %p1710_p1, %p1709_p13 }
  0x4e   : > { %p1707_p11 = pneg %p1706_p10  ;;  %p1713_p7 = por %p1712_p6, %p1711_p3 }
  0x50   : > { %p1714_p9 = pnand %p1713_p7, %p1707_p11 }
  0x52   : > { %1717 = shalt.err (!%p1714_p9)
}
  0x53   : > { %s1718_s19 = scalar_lea.vmem %s2114_s22, %s2101_s27  ;;  %s1967_s14 = smov [#allocation2]  }
  0x54   : > { %p1719_p12 = scmp.ne.s32.totalorder %s2114_s22, %s1718_s19  ;;  %s1722_s12 = sshll.u32 %s1967_s14, 4  ;;  %s1723_s12 = int_to_ptr.vmem [resolvable:$false] %s1722_s12 }
  0x55   : > { %s1724_s18 = scalar_lea.vmem %s1723_s12, 512  ;;  %p1725_p4 = scmp.lt.s32.totalorder %s2114_s22, %s1723_s12 }
  0x56   : > { %p1720_p0 = pnand %p1719_p12, %p1302_p5  ;;  %p1726_p8 = scmp.lt.s32.totalorder %s1724_s18, %s1718_s19 }
  0x58   : > { %p1721_p2 = pneg %p1720_p0  ;;  %p1727_p10 = por %p1726_p8, %p1725_p4 }
  0x5a   : > { %p1728_p13 = pnand %p1727_p10, %p1721_p2 }
  0x5c   : > { %1731 = shalt.err (!%p1728_p13)
}
  0x5d   : > { %s1968_s23 = smov 128   ;;  %s1969_s24 = smov 8  }
  0x5e   : > { %300 = dma.hbm_to_vmem [thread:$0]  (%p1302_p5), %s2112_s21, %s2101_s27, %s2114_s22, %s2104_s11, %s1968_s23, %s1968_s23, %s1969_s24  }
  0x5f PF: > { %p2334_p11 = scmp.ne.s32.totalorder %s2330_s17, 0 }
  0x60   : > { %s325_s25 = sand.u32 (!%p2334_p11), 1, %s1858_s28   ;;  %p2335_p1 = scmp.ne.s32.totalorder (!%p2334_p11), %s2328_s15, 0 }
  0x61   : > { %323 = sbr.rel (%p2334_p11) target bundleno = 735 (0x2df), region = 44  ;;  %s2144_s30 = sshll.u32 (!%p2334_p11), %s325_s25, 4 }
  0x62   : > { %s326_s26 = scalar_lea.sflag (!%p2334_p11), [#allocation3], %s325_s25  ;;  %s329_s20 = scalar_lea.vmem (!%p2334_p11), [#allocation2], %s2144_s30 }
  0x68   : > { %1845 = dma.done.wait (%p2335_p1), %s326_s26, 256  }
  0x69   : > { %1847 = vsyncadd (%p2335_p1), %s326_s26, 4294967040  ;;  %p2336_p5 = scmp.eq.s32.totalorder %s2035_s9, 0 }
  0x6b   : > { %1849 = dma.done.wait (%p2336_p5), [#allocation5], 4096   ;;  %p2337_p3 = pmov %p2336_p5 }
  0x6c   : > { %vm429_vm0 = vcmask 261120   ;;  %v418_v0 = vld [vmem:[%s2315_s1] sm:$0xff]  ;;  %v419_v1 = vld [vmem:[%s2315_s1 + $0x8] sm:$0xff]  ;;  %v420_v2 = vld [vmem:[%s2315_s1 + $0x10] sm:$0xff]  ;;  %v1970_v56 = vmov 0.0   ;;  %v545_v62 = vlaneseq  ;;  %s2180_s25 = sshll.u32 %s2035_s9, 1 }
  0x6d   : > { %1851 = vsyncadd (%p2337_p3), [#allocation5], 4294963200  ;;  %v1391_v3 = vpack.c.bf16 %v419_v1, %v418_v0  ;;  %v421_v4 = vld [vmem:[%s2315_s1 + $0x18] sm:$0xff]  ;;  %v416_v5 = vld [vmem:[%s329_s20] sm:$0xff]  ;;  %619 = vmatprep.mubr.f32.mxu1 %v1970_v56  ;;  %p392_p6 = scmp.lt.s32.totalorder %s2180_s25, 2  ;;  %vm644_vm1 = vcmask 130048  }
  0x6e   : > { %v1395_v6 = vpack.c.bf16 %v421_v4, %v420_v2  ;;  %1388 = vmatprep.mubr.msk.f32.mxu0 %vm429_vm0, %v416_v5  ;;  %v512_v7 = vld [vmem:[#allocation4 + $0x8] sm:$0xff]  ;;  %v514_v8 = vld [vmem:[#allocation4 + $0x18] sm:$0xff]  ;;  %v511_v9 = vld [vmem:[#allocation4] sm:$0xff]  ;;  %v546_v63 = vshrl.u32 %v545_v62, 7  ;;  %s2195_s22 = scalar_lea.vmem [#allocation7], %s2144_s30   ;;  %s2200_s19 = scalar_lea.vmem [#allocation6], %s2144_s30  }
  0x6f   : > { %1392 = vmatprep.subr.bf16.mxu0 %v1391_v3  ;;  %v1399_v10 = vpack.c.bf16 %v514_v8, %v512_v7  ;;  %v513_v11 = vld [vmem:[#allocation4 + $0x10] sm:$0xff]  ;;  %v516_v12 = vld [vmem:[#allocation4 + $0x28] sm:$0xff]  ;;  %v518_v13 = vld [vmem:[#allocation4 + $0x38] sm:$0xff]  ;;  %s393_s26 = scalar_select %p392_p6, %s2180_s25, 2 }
  0x70   : > { %1394 = vmatpush3.bf16.msra.mxu0 %v1391_v3  ;;  %v1401_v14 = vpack.c.bf16 %v513_v11, %v511_v9  ;;  %v1403_v15 = vpack.c.bf16 %v518_v13, %v516_v12  ;;  %v515_v16 = vld [vmem:[#allocation4 + $0x20] sm:$0xff]  ;;  %v517_v17 = vld [vmem:[#allocation4 + $0x30] sm:$0xff]  ;;  %v520_v18 = vld [vmem:[#allocation4 + $0x48] sm:$0xff]  ;;  %v547_v0 = vsub.s32 0, %v546_v63  ;;  %v551_v2 = vsub.s32 1, %v546_v63  ;;  %p2338_p7 = scmp.ne.s32.totalorder %s2329_s16, 0 }
  0x71   : > { %1396 = vmatprep.subr.bf16.mxu0 %v1395_v6  ;;  %1400 = vmatprep.subr.bf16.mxu1 %v1399_v10  ;;  %v522_v19 = vld [vmem:[#allocation4 + $0x58] sm:$0xff]  ;;  %v1405_v20 = vpack.c.bf16 %v517_v17, %v515_v16  ;;  %v519_v22 = vld [vmem:[#allocation4 + $0x40] sm:$0xff]  ;;  %v521_v23 = vld [vmem:[#allocation4 + $0x50] sm:$0xff]  ;;  %s1313_s17 = sshll.u32 %s393_s26, 3  ;;  %s667_s15 = ssub.s32 (%p2338_p7), 3, %s2180_s25 }
  0x72   : > { %1402 = vmatpush1.bf16.msra.mxu1 %v1401_v14  ;;  %v1407_v21 = vpack.c.bf16 %v522_v19, %v520_v18  ;;  %v417_v24 = vld [vmem:[%s329_s20 + $0x8] sm:$0xff]  ;;  %v1409_v27 = vpack.c.bf16 %v521_v23, %v519_v22  ;;  %v523_v29 = vld [vmem:[#allocation4 + $0x60] sm:$0xff]  ;;  %v525_v30 = vld [vmem:[#allocation4 + $0x70] sm:$0xff]  ;;  %s2185_s20 = scalar_lea.vmem [#allocation8], %s2144_s30   ;;  %s395_s21 = scalar_lea.vmem %s2319_s5, %s1313_s17 }
  0x73   : > { %1404 = vmatprep.subr.bf16.mxu1 %v1403_v15  ;;  %v524_v25 = vld [vmem:[#allocation4 + $0x68] sm:$0xff]  ;;  %v526_v26 = vld [vmem:[#allocation4 + $0x78] sm:$0xff]  ;;  %v1413_v33 = vpack.c.bf16 %v525_v30, %v523_v29  ;;  %v527_v35 = vld [vmem:[#allocation4 + $0x80] sm:$0xff]  ;;  %s1365_s14 = sshll.u32 (%p2338_p7), %s2035_s9, 4  ;;  %p668_p9 = scmp.lt.s32.totalorder (%p2338_p7), %s667_s15, 2 }
  0x74   : > { %1398 = vmatpush3.bf16.msra.mxu0 %v1395_v6  ;;  %v1411_v28 = vpack.c.bf16 %v526_v26, %v524_v25  ;;  %v528_v31 = vld [vmem:[#allocation4 + $0x88] sm:$0xff]  ;;  %v530_v32 = vld [vmem:[#allocation4 + $0x98] sm:$0xff]  ;;  %v529_v36 = vld [vmem:[#allocation4 + $0x90] sm:$0xff]  ;;  %s2215_s18 = scalar_lea.vmem (%p2338_p7), %s2320_s6, %s1365_s14  }
  0x75   : > { %v1415_v34 = vpack.c.bf16 %v530_v32, %v528_v31  ;;  %v532_v37 = vld [vmem:[#allocation4 + $0xa8] sm:$0xff]  ;;  %v534_v38 = vld [vmem:[#allocation4 + $0xb8] sm:$0xff]  ;;  %v1417_v39 = vpack.c.bf16 %v529_v36, %v527_v35  ;;  %v531_v41 = vld [vmem:[#allocation4 + $0xa0] sm:$0xff] }
  0x76   : > { %1406 = vmatpush1.bf16.msra.mxu1 %v1405_v20  ;;  %v1419_v40 = vpack.c.bf16 %v534_v38, %v532_v37  ;;  %v533_v42 = vld [vmem:[#allocation4 + $0xb0] sm:$0xff]  ;;  %v536_v43 = vld [vmem:[#allocation4 + $0xc8] sm:$0xff]  ;;  %v538_v44 = vld [vmem:[#allocation4 + $0xd8] sm:$0xff] }
  0x77   : > { %1389 = vmatmul.mubr.msk.f32.vlgmr.msra.gmra.mrb[0].mxu0 %vm429_vm0, %v417_v24  ;;  %1408 = vmatprep.subr.bf16.mxu1 %v1407_v21  ;;  %v1421_v45 = vpack.c.bf16 %v533_v42, %v531_v41  ;;  %v1423_v46 = vpack.c.bf16 %v538_v44, %v536_v43  ;;  %v535_v47 = vld [vmem:[#allocation4 + $0xc0] sm:$0xff]  ;;  %v537_v48 = vld [vmem:[#allocation4 + $0xd0] sm:$0xff]  ;;  %v540_v50 = vld [vmem:[#allocation4 + $0xe8] sm:$0xff] }
  0x78   : > { %v1425_v49 = vpack.c.bf16 %v537_v48, %v535_v47  ;;  %v542_v51 = vld [vmem:[#allocation4 + $0xf8] sm:$0xff]  ;;  %v539_v53 = vld [vmem:[#allocation4 + $0xe0] sm:$0xff]  ;;  %v541_v54 = vld [vmem:[#allocation4 + $0xf0] sm:$0xff] }
  0x79   : > { %v1427_v52 = vpack.c.bf16 %v542_v51, %v540_v50  ;;  %v1429_v55 = vpack.c.bf16 %v541_v54, %v539_v53  ;;  %v1314_v57 = vld [vmem:[%s2316_s2] ss:$0 sm:$0xff]  ;;  %v639_v20 = vld [vmem:[%s395_s21 + $0x8] sm:$0xff] }
  0x7a   : > { %1410 = vmatpush1.bf16.msra.mxu1 %v1409_v27  ;;  %v543_v1 = vld [vmem:[%s2318_s4] sm:$0x3] }
  0x7b   : > { %1412 = vmatprep.subr.bf16.mxu1 %v1411_v28  ;;  %v548_v3 = vrot.slane %v543_v1, %v547_v0  ;;  %v552_v4 = vrot.slane %v543_v1, %v551_v2  ;;  %v638_v17 = vld [vmem:[%s395_s21] sm:$0xff] }
  0x7e   : > { %1414 = vmatpush1.bf16.msra.mxu1 %v1413_v33 }
  0x7f   : > { %1416 = vmatprep.subr.bf16.mxu1 %v1415_v34 }
  0x82   : > { %1418 = vmatpush1.bf16.msra.mxu1 %v1417_v39 }
  0x83   : > { %1420 = vmatprep.subr.bf16.mxu1 %v1419_v40 }
  0x86   : > { %1422 = vmatpush1.bf16.msra.mxu1 %v1421_v45 }
  0x87   : > { %1424 = vmatprep.subr.bf16.mxu1 %v1423_v46 }
  0x8a   : > { %1426 = vmatpush1.bf16.msra.mxu1 %v1425_v49 }
  0x8b   : > { %1428 = vmatprep.subr.bf16.mxu1 %v1427_v52 }
  0x8e   : > { %1430 = vmatpush1.bf16.msra.mxu1 %v1429_v55 }
 0x14a   : > { %v1390_v58 = vpop.f32.mrb[0].mxu0 }
 0x14b   : > { %v502_v59 = vpop.f32.mrb[1].mxu0  ;;  %v508_v61 = vadd.f32 %v1390_v58, %v1314_v57 }
 0x14c   : > { %v503_v60 = vadd.f32 %v1314_v57, %v502_v59 }
 0x14e   : > { %620 = vmatmul.mubr.f32.vlgmr.msra.gmra.mrb[0].mxu1 %v503_v60 }
 0x14f   : > { %625 = vmatprep.mubr.f32.mxu1 %v1970_v56 }
 0x152   : > { %626 = vmatmul.mubr.f32.gmra.mrb[2].mxu1 %v508_v61 }
 0x221   : > { %v621_v5 = vpop.f32.mrb[0].mxu1 }
 0x222   : > { %v622_v6 = vadd.f32 %v621_v5, %v548_v3  ;;  %v623_v7 = vpop.f32.mrb[1].mxu1 }
 0x223   : > { %v624_v8 = vadd.f32 %v623_v7, %v552_v4 }
 0x224   : > { %v632_v9 = vmul.f32 0.5, %v622_v6 }
 0x225   : > { %649 = vst.msk [vmem:[%s2185_s20] sm:$0xff] %vm644_vm1, %v624_v8  ;;  %v627_v10 = vpop.f32.mrb[2].mxu1  ;;  %v640_v18 = vmul.f32 %v638_v17, %v624_v8 }
 0x226   : > { %v634_v11 = vmul.f32 1.442695, %v632_v9  ;;  %v628_v12 = vadd.f32 %v627_v10, %v548_v3  ;;  %v629_v13 = vpop.f32.mrb[3].mxu1 }
 0x227   : > { %v630_v14 = vadd.f32 %v629_v13, %v552_v4 }
 0x228   : > { %1672 = vpow2.f32 %v634_v11  ;;  %v633_v15 = vmul.f32 0.5, %v628_v12 }
 0x229   : > { %650 = vst.msk [vmem:[%s2185_s20 + $0x8] sm:$0xff] %vm644_vm1, %v630_v14  ;;  %v641_v22 = vmul.f32 %v639_v20, %v630_v14 }
 0x22a   : > { %v636_v16 = vmul.f32 1.442695, %v633_v15 }
 0x22c   : > { %1674 = vpow2.f32 %v636_v16 }
 0x232   : > { %v1673_v19 = vpop.eup %1672 }
 0x233   : > { %v642_v21 = vadd.f32 %v1673_v19, %v640_v18  ;;  %647 = vst.msk [vmem:[%s2195_s22] sm:$0xff] %vm644_vm1, %v1673_v19  ;;  %665 = sbr.rel (!%p2338_p7) target bundleno = 619 (0x26b), region = 56 }
 0x235   : > { %645 = vst.msk [vmem:[%s2200_s19] sm:$0xff] %vm644_vm1, %v642_v21 }
 0x236   : > { %v1675_v23 = vpop.eup %1674 }
 0x237   : > { %648 = vst.msk [vmem:[%s2195_s22 + $0x8] sm:$0xff] %vm644_vm1, %v1675_v23  ;;  %v643_v24 = vadd.f32 %v1675_v23, %v641_v22 }
 0x239   : > { %646 = vst.msk [vmem:[%s2200_s19 + $0x8] sm:$0xff] %vm644_vm1, %v643_v24 }
 0x23a   : > { %s2348_s15 = smov (!%p668_p9, %s667_s15), 2 }
 0x23b   : > { %s1321_s23 = sshll.u32 %s2348_s15, 7 }
 0x23c   : > { %p1324_p12 = scmp.eq.s32.totalorder %s1321_s23, 0 }
 0x23d   : > { %s2221_s24 = sshrl.u32 (!%p1324_p12), %s2348_s15, 1 }
 0x23e   : > { %676 = sbr.rel (%p1324_p12) target bundleno = 619 (0x26b), region = 60  ;;  %p1325_p0 = scmp.le.s32.totalorder (!%p1324_p12), %s2221_s24, 0 }
 0x245   : > { %1159 = sbr.rel (%p1325_p0) target bundleno = 598 (0x256), region = 289  ;;  %s1868_s26 = smov (!%p1325_p0), %s2215_s18  }
 0x246   : > { %s1872_s17 = smov (!%p1325_p0), %s2200_s19   ;;  %s1876_s27 = smov (!%p1325_p0), 0  }
 0x247   : > { %s1880_s11 = smov (!%p1325_p0), 0  }
 0x24c LB: >> { %v740_v25 = vld [vmem:[%s1874_s17] sm:$0xff]  ;;  %v742_v26 = vld [vmem:[%s1874_s17 + $0x8] sm:$0xff]  ;;  %s744_s21 = sadd.s32 1, %s1878_s27  ;;  %s734_s11 = sadd.s32 1, %s1882_s11   ;;  %s1882_s11 = sphi %s1880_s11, %s734_s11   ;;  %s1878_s27 = sphi %s1876_s27, %s1877_s27   ;;  %s1874_s17 = sphi %s1872_s17, %s749_s17   ;;  %s1870_s26 = sphi %s1868_s26, %s750_s26  }
 0x24d   : >> { %741 = vst [vmem:[%s1870_s26] sm:$0xff] %v740_v25  ;;  %743 = vst [vmem:[%s1870_s26 + $0x8] sm:$0xff] %v742_v26  ;;  %p745_p2 = scmp.ge.s32.totalorder %s744_s21, %s2221_s24  ;;  %p733_p4 = scmp.ge.s32.totalorder %s734_s11, %s2221_s24 }
 0x24f   : >> { %s2350_s21 = smov (%p745_p2, %s744_s21), 0  ;;  %736 = sbr.rel (!%p733_p4) target bundleno = 588 (0x24c), region = 295 }
 0x250   : >> { %s1326_s14 = sshll.u32 %s2350_s21, 4  ;;  %s1877_s27 = smov %s2350_s21  }
 0x251   : >> { %s749_s17 = scalar_lea.vmem %s2200_s19, %s1326_s14 [#allocation6]   ;;  %s750_s26 = scalar_lea.vmem %s2215_s18, %s1326_s14  }
 0x256 PF: > { %s2231_s30 = sand.u32 1, %s2348_s15   ;;  %s1366_s12 = sshll.u32 %s2221_s24, 4 }
 0x257   : > { %s755_s23 = scalar_lea.vmem %s2200_s19, %s1366_s12 [#allocation6]   ;;  %s757_s27 = scalar_lea.vmem %s2215_s18, %s1366_s12  }
 0x258   : > { %p1331_p8 = scmp.le.s32.totalorder %s2231_s30, 0 }
 0x259   : > { %s1884_s14 = smov (!%p1331_p8), %s757_s27   ;;  %s1888_s0 = smov (!%p1331_p8), %s755_s23  }
 0x25a   : > { %1173 = sbr.rel (%p1331_p8) target bundleno = 619 (0x26b), region = 300  ;;  %s1892_s26 = smov (!%p1331_p8), 0  }
 0x25b   : > { %s1896_s17 = smov (!%p1331_p8), 0  }
 0x261 LB: >> { %v767_v27 = vld [vmem:[%s1890_s0] sm:$0xff]  ;;  %s769_s15 = sadd.s32 1, %s1894_s26  ;;  %s761_s17 = sadd.s32 1, %s1898_s17   ;;  %s1898_s17 = sphi %s1896_s17, %s761_s17   ;;  %s1894_s26 = sphi %s1892_s26, %s1893_s26   ;;  %s1890_s0 = sphi %s1888_s0, %s774_s0   ;;  %s1886_s14 = sphi %s1884_s14, %s775_s14  }
 0x262   : >> { %768 = vst [vmem:[%s1886_s14] sm:$0xff] %v767_v27  ;;  %p770_p10 = scmp.ge.s32.totalorder %s769_s15, %s2231_s30  ;;  %p760_p13 = scmp.ge.s32.totalorder %s761_s17, %s2231_s30 }
 0x264   : >> { %s2352_s15 = smov (%p770_p10, %s769_s15), 0  ;;  %763 = sbr.rel (!%p760_p13) target bundleno = 609 (0x261), region = 306 }
 0x265   : >> { %s1332_s19 = sshll.u32 %s2352_s15, 3  ;;  %s1893_s26 = smov %s2352_s15  }
 0x266   : >> { %s774_s0 = scalar_lea.vmem %s755_s23, %s1332_s19 [#allocation6]   ;;  %s775_s14 = scalar_lea.vmem %s757_s27, %s1332_s19  }
 0x26b PF: > { %p2339_p11 = scmp.ne.s32.totalorder %s2329_s16, 0 }
 0x26c   : > { %s783_s18 = ssub.s32 (%p2339_p11), 3, %s2180_s25  ;;  %s1368_s24 = sshll.u32 (%p2339_p11), %s2035_s9, 4 }
 0x26d   : > { %781 = sbr.rel (!%p2339_p11) target bundleno = 677 (0x2a5), region = 108  ;;  %p784_p1 = scmp.lt.s32.totalorder (%p2339_p11), %s783_s18, 2 }
 0x26e   : > { %s2246_s12 = scalar_lea.vmem (%p2339_p11), %s2321_s7, %s1368_s24  }
 0x274   : > { %s2354_s18 = smov (!%p784_p1, %s783_s18), 2 }
 0x275   : > { %s1335_s0 = sshll.u32 %s2354_s18, 7 }
 0x276   : > { %p1338_p5 = scmp.eq.s32.totalorder %s1335_s0, 0 }
 0x277   : > { %s2252_s30 = sshrl.u32 (!%p1338_p5), %s2354_s18, 1 }
 0x278   : > { %792 = sbr.rel (%p1338_p5) target bundleno = 677 (0x2a5), region = 112  ;;  %p1339_p3 = scmp.le.s32.totalorder (!%p1338_p5), %s2252_s30, 0 }
 0x27f   : > { %1187 = sbr.rel (%p1339_p3) target bundleno = 656 (0x290), region = 311  ;;  %s1900_s23 = smov (!%p1339_p3), %s2246_s12  }
 0x280   : > { %s1904_s27 = smov (!%p1339_p3), %s2195_s22   ;;  %s1908_s14 = smov (!%p1339_p3), 0  }
 0x281   : > { %s1912_s26 = smov (!%p1339_p3), 0  }
 0x286 LB: >> { %v856_v28 = vld [vmem:[%s1906_s27] sm:$0xff]  ;;  %v858_v29 = vld [vmem:[%s1906_s27 + $0x8] sm:$0xff]  ;;  %s860_s17 = sadd.s32 1, %s1910_s14  ;;  %s850_s26 = sadd.s32 1, %s1914_s26   ;;  %s1914_s26 = sphi %s1912_s26, %s850_s26   ;;  %s1910_s14 = sphi %s1908_s14, %s1909_s14   ;;  %s1906_s27 = sphi %s1904_s27, %s865_s27   ;;  %s1902_s23 = sphi %s1900_s23, %s866_s23  }
 0x287   : >> { %857 = vst [vmem:[%s1902_s23] sm:$0xff] %v856_v28  ;;  %859 = vst [vmem:[%s1902_s23 + $0x8] sm:$0xff] %v858_v29  ;;  %p861_p6 = scmp.ge.s32.totalorder %s860_s17, %s2252_s30  ;;  %p849_p7 = scmp.ge.s32.totalorder %s850_s26, %s2252_s30 }
 0x289   : >> { %s2356_s17 = smov (%p861_p6, %s860_s17), 0  ;;  %852 = sbr.rel (!%p849_p7) target bundleno = 646 (0x286), region = 317 }
 0x28a   : >> { %s1340_s15 = sshll.u32 %s2356_s17, 4  ;;  %s1909_s14 = smov %s2356_s17  }
 0x28b   : >> { %s865_s27 = scalar_lea.vmem %s2195_s22, %s1340_s15 [#allocation7]   ;;  %s866_s23 = scalar_lea.vmem %s2246_s12, %s1340_s15  }
 0x290 PF: > { %s2262_s19 = sand.u32 1, %s2354_s18   ;;  %s1369_s24 = sshll.u32 %s2252_s30, 4 }
 0x291   : > { %s871_s11 = scalar_lea.vmem %s2195_s22, %s1369_s24 [#allocation7]   ;;  %s873_s21 = scalar_lea.vmem %s2246_s12, %s1369_s24  }
 0x292   : > { %p1345_p9 = scmp.le.s32.totalorder %s2262_s19, 0 }
 0x293   : > { %s1916_s0 = smov (!%p1345_p9), %s873_s21   ;;  %s1920_s14 = smov (!%p1345_p9), %s871_s11  }
 0x294   : > { %1201 = sbr.rel (%p1345_p9) target bundleno = 677 (0x2a5), region = 322  ;;  %s1924_s23 = smov (!%p1345_p9), 0  }
 0x295   : > { %s1928_s27 = smov (!%p1345_p9), 0  }
 0x29b LB: >> { %v883_v30 = vld [vmem:[%s1922_s14] sm:$0xff]  ;;  %s885_s18 = sadd.s32 1, %s1926_s23  ;;  %s877_s27 = sadd.s32 1, %s1930_s27   ;;  %s1930_s27 = sphi %s1928_s27, %s877_s27   ;;  %s1926_s23 = sphi %s1924_s23, %s1925_s23   ;;  %s1922_s14 = sphi %s1920_s14, %s890_s14   ;;  %s1918_s0 = sphi %s1916_s0, %s891_s0  }
 0x29c   : >> { %884 = vst [vmem:[%s1918_s0] sm:$0xff] %v883_v30  ;;  %p886_p12 = scmp.ge.s32.totalorder %s885_s18, %s2262_s19  ;;  %p876_p0 = scmp.ge.s32.totalorder %s877_s27, %s2262_s19 }
 0x29e   : >> { %s2358_s18 = smov (%p886_p12, %s885_s18), 0  ;;  %879 = sbr.rel (!%p876_p0) target bundleno = 667 (0x29b), region = 328 }
 0x29f   : >> { %s1346_s22 = sshll.u32 %s2358_s18, 3  ;;  %s1925_s23 = smov %s2358_s18  }
 0x2a0   : >> { %s890_s14 = scalar_lea.vmem %s871_s11, %s1346_s22 [#allocation7]   ;;  %s891_s0 = scalar_lea.vmem %s873_s21, %s1346_s22  }
 0x2a5 PF: > { %p2340_p2 = scmp.ne.s32.totalorder %s2329_s16, 0 }
 0x2a6   : > { %s899_s12 = ssub.s32 (%p2340_p2), 3, %s2180_s25  ;;  %s1371_s30 = sshll.u32 (%p2340_p2), %s2035_s9, 4 }
 0x2a7   : > { %897 = sbr.rel (!%p2340_p2) target bundleno = 735 (0x2df), region = 160  ;;  %p900_p4 = scmp.lt.s32.totalorder (%p2340_p2), %s899_s12, 2 }
 0x2a8   : > { %s2277_s15 = scalar_lea.vmem (%p2340_p2), %s2322_s8, %s1371_s30  }
 0x2ae   : > { %s2360_s12 = smov (!%p900_p4, %s899_s12), 2 }
 0x2af   : > { %s1349_s24 = sshll.u32 %s2360_s12, 7 }
 0x2b0   : > { %p1352_p8 = scmp.eq.s32.totalorder %s1349_s24, 0 }
 0x2b1   : > { %s2283_s19 = sshrl.u32 (!%p1352_p8), %s2360_s12, 1 }
 0x2b2   : > { %908 = sbr.rel (%p1352_p8) target bundleno = 735 (0x2df), region = 164  ;;  %p1353_p10 = scmp.le.s32.totalorder (!%p1352_p8), %s2283_s19, 0 }
 0x2b9   : > { %1215 = sbr.rel (%p1353_p10) target bundleno = 714 (0x2ca), region = 333  ;;  %s1932_s9 = smov (!%p1353_p10), %s2277_s15  }
 0x2ba   : > { %s1936_s16 = smov (!%p1353_p10), %s2185_s20   ;;  %s1940_s25 = smov (!%p1353_p10), 0  }
 0x2bb   : > { %s1944_s11 = smov (!%p1353_p10), 0  }
 0x2c0 LB: >> { %v972_v31 = vld [vmem:[%s1938_s16] sm:$0xff]  ;;  %v974_v32 = vld [vmem:[%s1938_s16 + $0x8] sm:$0xff]  ;;  %s976_s21 = sadd.s32 1, %s1942_s25  ;;  %s966_s11 = sadd.s32 1, %s1946_s11   ;;  %s1946_s11 = sphi %s1944_s11, %s966_s11   ;;  %s1942_s25 = sphi %s1940_s25, %s1941_s25   ;;  %s1938_s16 = sphi %s1936_s16, %s981_s16   ;;  %s1934_s9 = sphi %s1932_s9, %s982_s9  }
 0x2c1   : >> { %973 = vst [vmem:[%s1934_s9] sm:$0xff] %v972_v31  ;;  %975 = vst [vmem:[%s1934_s9 + $0x8] sm:$0xff] %v974_v32  ;;  %p977_p13 = scmp.ge.s32.totalorder %s976_s21, %s2283_s19  ;;  %p965_p11 = scmp.ge.s32.totalorder %s966_s11, %s2283_s19 }
 0x2c3   : >> { %s2362_s21 = smov (%p977_p13, %s976_s21), 0  ;;  %968 = sbr.rel (!%p965_p11) target bundleno = 704 (0x2c0), region = 339 }
 0x2c4   : >> { %s1354_s0 = sshll.u32 %s2362_s21, 4  ;;  %s1941_s25 = smov %s2362_s21  }
 0x2c5   : >> { %s981_s16 = scalar_lea.vmem %s2185_s20, %s1354_s0 [#allocation8]   ;;  %s982_s9 = scalar_lea.vmem %s2277_s15, %s1354_s0  }
 0x2ca PF: > { %s2293_s14 = sand.u32 1, %s2360_s12   ;;  %s1372_s23 = sshll.u32 %s2283_s19, 4 }
 0x2cb   : > { %s987_s27 = scalar_lea.vmem %s2185_s20, %s1372_s23 [#allocation8]   ;;  %s989_s18 = scalar_lea.vmem %s2277_s15, %s1372_s23  }
 0x2cc   : > { %p1359_p1 = scmp.le.s32.totalorder %s2293_s14, 0 }
 0x2cd   : > { %s1948_s22 = smov (!%p1359_p1), %s989_s18   ;;  %s1952_s30 = smov (!%p1359_p1), %s987_s27  }
 0x2ce   : > { %1229 = sbr.rel (%p1359_p1) target bundleno = 735 (0x2df), region = 344  ;;  %s1956_s26 = smov (!%p1359_p1), 0  }
 0x2cf   : > { %s1960_s17 = smov (!%p1359_p1), 0  }
 0x2d5 LB: >> { %v999_v33 = vld [vmem:[%s1954_s30] sm:$0xff]  ;;  %s1001_s12 = sadd.s32 1, %s1958_s26  ;;  %s993_s17 = sadd.s32 1, %s1962_s17   ;;  %s1962_s17 = sphi %s1960_s17, %s993_s17   ;;  %s1958_s26 = sphi %s1956_s26, %s1957_s26   ;;  %s1954_s30 = sphi %s1952_s30, %s1006_s30   ;;  %s1950_s22 = sphi %s1948_s22, %s1007_s22  }
 0x2d6   : >> { %1000 = vst [vmem:[%s1950_s22] sm:$0xff] %v999_v33  ;;  %p1002_p5 = scmp.ge.s32.totalorder %s1001_s12, %s2293_s14  ;;  %p992_p3 = scmp.ge.s32.totalorder %s993_s17, %s2293_s14 }
 0x2d8   : >> { %s2364_s12 = smov (%p1002_p5, %s1001_s12), 0  ;;  %995 = sbr.rel (!%p992_p3) target bundleno = 725 (0x2d5), region = 350 }
 0x2d9   : >> { %s1360_s20 = sshll.u32 %s2364_s12, 3  ;;  %s1957_s26 = smov %s2364_s12  }
 0x2da   : >> { %s1006_s30 = scalar_lea.vmem %s987_s27, %s1360_s20 [#allocation8]   ;;  %s1007_s22 = scalar_lea.vmem %s989_s18, %s1360_s20  }
 0x2df PF: > { %p20_p6 = scmp.ge.s32.totalorder %s2038_s10, 4   ;;  %s2341_s27 = smov %s1858_s28 }
 0x2e0   : > { %s2342_s28 = smov %s1862_s29  ;;  %s2343_s29 = smov %s2048_s13 }
 0x2e1   : > { %s2344_s30 = smov %s2038_s10  ;;  %22 = sbr.rel (!%p20_p6) target bundleno = 6 (0x6), region = 361 }
 0x2e8   :  { %1037 = vsyncpa [#allocation3], 1 }
 0x2e9   :  { %1039 = vsyncpa [#allocation3 + $0x1], 1 }
 0x2ea   :  { %1040 = vsyncpa [#allocation5], 1 }

</bundles_post_ra>
